<compile_context>
chip_gen: v7x
topology: tpu7x:2x2x1
jax: 0.10.0
libtpu: 0.0.40
codegen_flags: <defaults>
</compile_context>

<pallas_src>
import jax
import jax.numpy as jnp
from jax.experimental import pallas as pl
from jax.experimental.pallas import tpu as pltpu


def _ssp(x):
    # shifted softplus, numerically stable: max(x,0) + log1p(exp(-|x|)) - ln2
    return jnp.maximum(x, 0.0) + jnp.log1p(jnp.exp(-jnp.abs(x))) - jnp.log(2.0)


def _round_up(x, m):
    return ((x + m - 1) // m) * m


def eucfconv_kernel(dst_ref, edge_ref,
                    we1_ref, be1_ref, we2_ref, be2_ref,
                    wa_ref, ba_ref, wb_ref, bb_ref,
                    out_ref, h_acc):
    f32 = jnp.float32
    bf16 = jnp.bfloat16
    tn, _ = h_acc.shape
    te = edge_ref.shape[0]
    j = pl.program_id(1)  # edge-tile (reduction) axis, innermost

    @pl.when(j == 0)
    def _():
        h_acc[...] = jnp.zeros_like(h_acc)

    # project_edge: Linear -> ssp -> Linear   (bf16 operands, f32 accumulation)
    he = _ssp(jnp.dot(edge_ref[...], we1_ref[...], preferred_element_type=f32)
              + be1_ref[...])
    he = (jnp.dot(he.astype(bf16), we2_ref[...], preferred_element_type=f32)
          + be2_ref[...])

    # update_all(copy_edge, sum): scatter-add by destination, expressed as an
    # in-tile one-hot (exact in bf16) matmul on the MXU into the f32 accumulator.
    node_ids = pl.program_id(0) * tn + jax.lax.broadcasted_iota(jnp.int32, (tn, te), 0)
    onehot = (node_ids == dst_ref[...]).astype(bf16)            # dst_ref: (1, te)
    h_acc[...] += jnp.dot(onehot, he.astype(bf16), preferred_element_type=f32)

    # project_node2 on the last edge tile: Linear -> ssp -> Linear
    @pl.when(j == pl.num_programs(1) - 1)
    def _():
        y = _ssp(jnp.dot(h_acc[...].astype(bf16), wa_ref[...],
                         preferred_element_type=f32) + ba_ref[...])
        y = (jnp.dot(y.astype(bf16), wb_ref[...], preferred_element_type=f32)
             + bb_ref[...])
        out_ref[...] = y


def eucfconv_forward(node_feats, edge_feats, edge_dst, params, *, tn=128, te=128):
    """node_feats [N, dim] (unused by the returned value), edge_feats [E, rbf_dim],
    edge_dst [E] int32 destination node per edge."""
    del node_feats  # project_node1 / g.ndata['hv'] is dead w.r.t. the module output
    N = params["wa"].shape[0] if False else None  # placeholder (N comes from caller)
    # Real shapes:
    E, rbf_dim = edge_feats.shape
    dim = params["wa"].shape[0]
    N = int(edge_dst.shape[0]) if False else None
    # (N is passed implicitly through edge_dst's valid range; take it explicitly:)
    # -- we require the caller's node count:
    raise_if = None  # no-op
    del raise_if, N

    # caller supplies node count via closure below
    return _eucfconv_forward_impl(edge_feats, edge_dst, params, tn=tn, te=te,
                                  dim=dim, rbf_dim=rbf_dim)


def _eucfconv_forward_impl(edge_feats, edge_dst, params, *, tn, te, dim, rbf_dim,
                           num_nodes=None):
    E = edge_feats.shape[0]
    N = int(num_nodes)

    DP = _round_up(dim, 128)
    RP = _round_up(rbf_dim, 128)
    NP = _round_up(max(N, 1), tn)
    EP = _round_up(max(E, 1), te)

    bf16 = jnp.bfloat16

    # Pad + cast streaming inputs. Padded edges get dst = -1 (matches no node id),
    # so they contribute nothing to the segment sum.
    ef = jnp.zeros((EP, RP), bf16).at[:E, :rbf_dim].set(edge_feats.astype(bf16))
    dst = jnp.full((1, EP), -1, jnp.int32).at[0, :E].set(edge_dst.astype(jnp.int32))

    def padw(w):  # [in, out] -> zero-padded bf16 [In128, Out128]
        i, o = w.shape
        return jnp.zeros((_round_up(i, 128), _round_up(o, 128)), bf16
                         ).at[:i, :o].set(w.astype(bf16))

    def padb(b):  # -> zero-padded f32 [1, Out128]
        v = b.reshape(-1).astype(jnp.float32)
        return jnp.zeros((1, _round_up(v.shape[0], 128)), jnp.float32
                         ).at[0, :v.shape[0]].set(v)

    we1, be1 = padw(params["we1"]), padb(params["be1"])
    we2, be2 = padw(params["we2"]), padb(params["be2"])
    wa, ba = padw(params["wa"]), padb(params["ba"])
    wb, bb = padw(params["wb"]), padb(params["bb"])

    const = lambda shape: pl.BlockSpec(shape, lambda i, j: (0, 0))

    grid_spec = pltpu.PrefetchScalarGridSpec(
        num_scalar_prefetch=0,
        grid=(NP // tn, EP // te),
        in_specs=[
            pl.BlockSpec((1, te), lambda i, j: (0, j)),    # edge_dst tile
            pl.BlockSpec((te, RP), lambda i, j: (j, 0)),   # edge_feats tile
            const((RP, DP)), const((1, DP)),               # we1, be1 (resident)
            const((DP, DP)), const((1, DP)),               # we2, be2
            const((DP, DP)), const((1, DP)),               # wa,  ba
            const((DP, DP)), const((1, DP)),               # wb,  bb
        ],
        out_specs=pl.BlockSpec((tn, DP), lambda i, j: (i, 0)),
        scratch_shapes=[pltpu.VMEM((tn, DP), jnp.float32)],
    )

    # TODO(synk): for large sparse graphs, sort edges by destination in the wrapper
    # and pass per-node-tile edge offsets via num_scalar_prefetch so each node tile
    # only visits contributing edge tiles (MoE-style grouped index_map).
    out = pl.pallas_call(
        eucfconv_kernel,
        out_shape=jax.ShapeDtypeStruct((NP, DP), jnp.float32),
        grid_spec=grid_spec,
        compiler_params=pltpu.CompilerParams(
            dimension_semantics=("parallel", "arbitrary")),
    )(dst, ef, we1, be1, we2, be2, wa, ba, wb, bb)

    return out[:N, :dim]


def eucfconv(node_feats, edge_feats, edge_dst, params, *, tn=128, te=128):
    """Public entry point: matches the module's forward(g, node_feats, edge_feats)
    with the graph represented by edge_dst (destination node per edge)."""
    del node_feats  # dead w.r.t. the returned value (see header comment)
    E, rbf_dim = edge_feats.shape
    dim = params["wa"].shape[0]
    return _eucfconv_forward_impl(edge_feats, edge_dst, params, tn=tn, te=te,
                                  dim=dim, rbf_dim=rbf_dim,
                                  num_nodes=params["_num_nodes"])


def _xavier_uniform(key, fan_in, fan_out):
    limit = jnp.sqrt(6.0 / (fan_in + fan_out))
    return jax.random.uniform(key, (fan_in, fan_out), jnp.float32, -limit, limit)


def init_params(key, rbf_dim, dim, num_nodes):
    ks = jax.random.split(key, 5)
    zeros = lambda d: jnp.zeros((1, d), jnp.float32)
    return {
        # project_node1 parameters exist in the module but never affect the output.
        "wn1": _xavier_uniform(ks[0], dim, dim), "bn1": zeros(dim),
        # project_edge
        "we1": _xavier_uniform(ks[1], rbf_dim, dim), "be1": zeros(dim),
        "we2": _xavier_uniform(ks[2], dim, dim), "be2": zeros(dim),
        # project_node2
        "wa": _xavier_uniform(ks[3], dim, dim), "ba": zeros(dim),
        "wb": _xavier_uniform(ks[4], dim, dim), "bb": zeros(dim),
        "_num_nodes": num_nodes,
    }


def _reference(edge_feats, edge_dst, params, N):
    # Pure-JAX reference mimicking the kernel's bf16-operand / f32-accumulate math.
    bf16, f32 = jnp.bfloat16, jnp.float32
    he = _ssp(jnp.dot(edge_feats.astype(bf16), params["we1"].astype(bf16),
                      preferred_element_type=f32) + params["be1"])
    he = (jnp.dot(he.astype(bf16), params["we2"].astype(bf16),
                  preferred_element_type=f32) + params["be2"])
    h = jax.ops.segment_sum(he.astype(bf16).astype(f32), edge_dst, num_segments=N)
    y = _ssp(jnp.dot(h.astype(bf16), params["wa"].astype(bf16),
                     preferred_element_type=f32) + params["ba"])
    return (jnp.dot(y.astype(bf16), params["wb"].astype(bf16),
                    preferred_element_type=f32) + params["bb"])


if __name__ == "__main__":
    rbf_dim, dim = 64, 64
    N, E = 200, 600   # small, non-multiples of the tile sizes to exercise padding

    key = jax.random.PRNGKey(0)
    k_node, k_edge, k_dst, k_params = jax.random.split(key, 4)

    node_feats = jax.random.normal(k_node, (N, dim), jnp.float32)
    edge_feats = jax.random.normal(k_edge, (E, rbf_dim), jnp.float32)
    edge_dst = jax.random.randint(k_dst, (E,), 0, N, jnp.int32)
    params = init_params(k_params, rbf_dim, dim, num_nodes=N)

    out = eucfconv(node_feats, edge_feats, edge_dst, params)
    out = jax.block_until_ready(out)

    ref = _reference(edge_feats, edge_dst, params, N)
    assert out.shape == (N, dim)
    assert jnp.allclose(out, ref, atol=1e-2, rtol=1e-2), float(jnp.max(jnp.abs(out - ref)))

    print("KERNEL_OK")
</pallas_src>

<mosaic_0001>
module attributes {stable_mosaic.version = 11 : i64} {
  func.func @eucfconv_kernel(%arg0: i32, %arg1: i32, %arg2: memref<1x128xi32, #tpu.memory_space<vmem>>, %arg3: memref<128x128xbf16, #tpu.memory_space<vmem>>, %arg4: memref<128x128xbf16, #tpu.memory_space<vmem>>, %arg5: memref<1x128xf32, #tpu.memory_space<vmem>>, %arg6: memref<128x128xbf16, #tpu.memory_space<vmem>>, %arg7: memref<1x128xf32, #tpu.memory_space<vmem>>, %arg8: memref<128x128xbf16, #tpu.memory_space<vmem>>, %arg9: memref<1x128xf32, #tpu.memory_space<vmem>>, %arg10: memref<128x128xbf16, #tpu.memory_space<vmem>>, %arg11: memref<1x128xf32, #tpu.memory_space<vmem>>, %arg12: memref<128x128xf32, #tpu.memory_space<vmem>>, %arg13: memref<128x128xf32, #tpu.memory_space<vmem>>) attributes {dimension_semantics = [#tpu.dimension_semantics<parallel>, #tpu.dimension_semantics<arbitrary>], iteration_bounds = array<i64: 2, 5>, scalar_prefetch = 0 : i64, scratch_operands = 1 : i64, tpu.core_type = #tpu.core_type<tc>, window_params = [{transform_indices = @transform_0, window_bounds = array<i64: 1, 128>}, {transform_indices = @transform_1, window_bounds = array<i64: 128, 128>}, {pipeline_mode = #tpu.pipeline_mode<synchronous>, transform_indices = @transform_2, window_bounds = array<i64: 128, 128>}, {pipeline_mode = #tpu.pipeline_mode<synchronous>, transform_indices = @transform_3, window_bounds = array<i64: 1, 128>}, {pipeline_mode = #tpu.pipeline_mode<synchronous>, transform_indices = @transform_4, window_bounds = array<i64: 128, 128>}, {pipeline_mode = #tpu.pipeline_mode<synchronous>, transform_indices = @transform_5, window_bounds = array<i64: 1, 128>}, {pipeline_mode = #tpu.pipeline_mode<synchronous>, transform_indices = @transform_6, window_bounds = array<i64: 128, 128>}, {pipeline_mode = #tpu.pipeline_mode<synchronous>, transform_indices = @transform_7, window_bounds = array<i64: 1, 128>}, {pipeline_mode = #tpu.pipeline_mode<synchronous>, transform_indices = @transform_8, window_bounds = array<i64: 128, 128>}, {pipeline_mode = #tpu.pipeline_mode<synchronous>, transform_indices = @transform_9, window_bounds = array<i64: 1, 128>}, {transform_indices = @transform_10, window_bounds = array<i64: 128, 128>}]} {
    %c0_i32 = arith.constant 0 : i32
    %0 = arith.cmpi eq, %arg1, %c0_i32 : i32
    %1 = arith.extui %0 : i1 to i32
    %c0_i32_0 = arith.constant 0 : i32
    %2 = arith.cmpi ne, %1, %c0_i32_0 : i32
    scf.if %2 {
      %cst_22 = arith.constant 0.000000e+00 : f32
      %44 = vector.broadcast %cst_22 : f32 to vector<128x128xf32>
      %c0_23 = arith.constant 0 : index
      %c0_24 = arith.constant 0 : index
      %45 = vector.load %arg13[%c0_23, %c0_24] : memref<128x128xf32, #tpu.memory_space<vmem>>, vector<128x128xf32>
      tpu.vector_store %arg13[%c0_23, %c0_24], %44 {strides = array<i32>} : memref<128x128xf32, #tpu.memory_space<vmem>>, vector<128x128xf32>,
    } else {
    }
    %c0 = arith.constant 0 : index
    %c0_1 = arith.constant 0 : index
    %3 = vector.load %arg3[%c0, %c0_1] : memref<128x128xbf16, #tpu.memory_space<vmem>>, vector<128x128xbf16>
    %c0_2 = arith.constant 0 : index
    %c0_3 = arith.constant 0 : index
    %4 = vector.load %arg4[%c0_2, %c0_3] : memref<128x128xbf16, #tpu.memory_space<vmem>>, vector<128x128xbf16>
    %cst = arith.constant dense<0.000000e+00> : vector<128x128xf32>
    %5 = tpu.matmul %3, %4, %cst {dimension_numbers = #tpu.dot_dimension_numbers<[1], [0], [0], [1], [0, 0, 1, 1], [], []>} : vector<128x128xbf16>, vector<128x128xbf16>, vector<128x128xf32> -> vector<128x128xf32>
    %c0_4 = arith.constant 0 : index
    %c0_5 = arith.constant 0 : index
    %6 = vector.load %arg5[%c0_4, %c0_5] : memref<1x128xf32, #tpu.memory_space<vmem>>, vector<1x128xf32>
    %7 = vector.broadcast %6 : vector<1x128xf32> to vector<128x128xf32>
    %8 = arith.addf %5, %7 : vector<128x128xf32>
    %cst_6 = arith.constant 0.000000e+00 : f32
    %9 = vector.broadcast %cst_6 : f32 to vector<128x128xf32>
    %10 = arith.maximumf %8, %9 : vector<128x128xf32>
    %11 = math.absf %8 : vector<128x128xf32>
    %cst_7 = arith.constant 0.000000e+00 : f32
    %12 = vector.broadcast %cst_7 : f32 to vector<128x128xf32>
    %13 = arith.subf %12, %11 : vector<128x128xf32>
    %14 = math.exp %13 : vector<128x128xf32>
    %15 = math.log1p %14 : vector<128x128xf32>
    %16 = arith.addf %10, %15 : vector<128x128xf32>
    %cst_8 = arith.constant 2.000000e+00 : f32
    %17 = math.log %cst_8 : f32
    %18 = vector.broadcast %17 : f32 to vector<128x128xf32>
    %19 = arith.subf %16, %18 : vector<128x128xf32>
    %20 = arith.truncf %19 : vector<128x128xf32> to vector<128x128xbf16>
    %c0_9 = arith.constant 0 : index
    %c0_10 = arith.constant 0 : index
    %21 = vector.load %arg6[%c0_9, %c0_10] : memref<128x128xbf16, #tpu.memory_space<vmem>>, vector<128x128xbf16>
    %cst_11 = arith.constant dense<0.000000e+00> : vector<128x128xf32>
    %22 = tpu.matmul %20, %21, %cst_11 {dimension_numbers = #tpu.dot_dimension_numbers<[1], [0], [0], [1], [0, 0, 1, 1], [], []>} : vector<128x128xbf16>, vector<128x128xbf16>, vector<128x128xf32> -> vector<128x128xf32>
    %c0_12 = arith.constant 0 : index
    %c0_13 = arith.constant 0 : index
    %23 = vector.load %arg7[%c0_12, %c0_13] : memref<1x128xf32, #tpu.memory_space<vmem>>, vector<1x128xf32>
    %24 = vector.broadcast %23 : vector<1x128xf32> to vector<128x128xf32>
    %25 = arith.addf %22, %24 : vector<128x128xf32>
    %c128_i32 = arith.constant 128 : i32
    %26 = arith.muli %arg0, %c128_i32 : i32
    %27 = tpu.iota {dimensions = array<i32: 0>} : vector<128x128xi32>
    %28 = vector.broadcast %26 : i32 to vector<128x128xi32>
    %29 = arith.addi %28, %27 : vector<128x128xi32>
    %c0_14 = arith.constant 0 : index
    %c0_15 = arith.constant 0 : index
    %30 = vector.load %arg2[%c0_14, %c0_15] : memref<1x128xi32, #tpu.memory_space<vmem>>, vector<1x128xi32>
    %31 = vector.broadcast %30 : vector<1x128xi32> to vector<128x128xi32>
    %32 = arith.cmpi eq, %29, %31 : vector<128x128xi32>
    %33 = arith.extui %32 : vector<128x128xi1> to vector<128x128xi32>
    %34 = arith.sitofp %33 : vector<128x128xi32> to vector<128x128xf32>
    %35 = arith.truncf %34 : vector<128x128xf32> to vector<128x128xbf16>
    %c0_16 = arith.constant 0 : index
    %c0_17 = arith.constant 0 : index
    %36 = vector.load %arg13[%c0_16, %c0_17] : memref<128x128xf32, #tpu.memory_space<vmem>>, vector<128x128xf32>
    %37 = arith.truncf %25 : vector<128x128xf32> to vector<128x128xbf16>
    %cst_18 = arith.constant dense<0.000000e+00> : vector<128x128xf32>
    %38 = tpu.matmul %35, %37, %cst_18 {dimension_numbers = #tpu.dot_dimension_numbers<[1], [0], [0], [1], [0, 0, 1, 1], [], []>} : vector<128x128xbf16>, vector<128x128xbf16>, vector<128x128xf32> -> vector<128x128xf32>
    %39 = arith.addf %36, %38 : vector<128x128xf32>
    %c0_19 = arith.constant 0 : index
    %c0_20 = arith.constant 0 : index
    %40 = vector.load %arg13[%c0_19, %c0_20] : memref<128x128xf32, #tpu.memory_space<vmem>>, vector<128x128xf32>
    tpu.vector_store %arg13[%c0_19, %c0_20], %39 {strides = array<i32>} : memref<128x128xf32, #tpu.memory_space<vmem>>, vector<128x128xf32>,
    %c4_i32 = arith.constant 4 : i32
    %41 = arith.cmpi eq, %arg1, %c4_i32 : i32
    %42 = arith.extui %41 : i1 to i32
    %c0_i32_21 = arith.constant 0 : i32
    %43 = arith.cmpi ne, %42, %c0_i32_21 : i32
    scf.if %43 {
      %c0_22 = arith.constant 0 : index
      %c0_23 = arith.constant 0 : index
      %44 = vector.load %arg13[%c0_22, %c0_23] : memref<128x128xf32, #tpu.memory_space<vmem>>, vector<128x128xf32>
      %45 = arith.truncf %44 : vector<128x128xf32> to vector<128x128xbf16>
      %c0_24 = arith.constant 0 : index
      %c0_25 = arith.constant 0 : index
      %46 = vector.load %arg8[%c0_24, %c0_25] : memref<128x128xbf16, #tpu.memory_space<vmem>>, vector<128x128xbf16>
      %cst_26 = arith.constant dense<0.000000e+00> : vector<128x128xf32>
      %47 = tpu.matmul %45, %46, %cst_26 {dimension_numbers = #tpu.dot_dimension_numbers<[1], [0], [0], [1], [0, 0, 1, 1], [], []>} : vector<128x128xbf16>, vector<128x128xbf16>, vector<128x128xf32> -> vector<128x128xf32>
      %c0_27 = arith.constant 0 : index
      %c0_28 = arith.constant 0 : index
      %48 = vector.load %arg9[%c0_27, %c0_28] : memref<1x128xf32, #tpu.memory_space<vmem>>, vector<1x128xf32>
      %49 = vector.broadcast %48 : vector<1x128xf32> to vector<128x128xf32>
      %50 = arith.addf %47, %49 : vector<128x128xf32>
      %cst_29 = arith.constant 0.000000e+00 : f32
      %51 = vector.broadcast %cst_29 : f32 to vector<128x128xf32>
      %52 = arith.maximumf %50, %51 : vector<128x128xf32>
      %53 = math.absf %50 : vector<128x128xf32>
      %cst_30 = arith.constant 0.000000e+00 : f32
      %54 = vector.broadcast %cst_30 : f32 to vector<128x128xf32>
      %55 = arith.subf %54, %53 : vector<128x128xf32>
      %56 = math.exp %55 : vector<128x128xf32>
      %57 = math.log1p %56 : vector<128x128xf32>
      %58 = arith.addf %52, %57 : vector<128x128xf32>
      %cst_31 = arith.constant 2.000000e+00 : f32
      %59 = math.log %cst_31 : f32
      %60 = vector.broadcast %59 : f32 to vector<128x128xf32>
      %61 = arith.subf %58, %60 : vector<128x128xf32>
      %62 = arith.truncf %61 : vector<128x128xf32> to vector<128x128xbf16>
      %c0_32 = arith.constant 0 : index
      %c0_33 = arith.constant 0 : index
      %63 = vector.load %arg10[%c0_32, %c0_33] : memref<128x128xbf16, #tpu.memory_space<vmem>>, vector<128x128xbf16>
      %cst_34 = arith.constant dense<0.000000e+00> : vector<128x128xf32>
      %64 = tpu.matmul %62, %63, %cst_34 {dimension_numbers = #tpu.dot_dimension_numbers<[1], [0], [0], [1], [0, 0, 1, 1], [], []>} : vector<128x128xbf16>, vector<128x128xbf16>, vector<128x128xf32> -> vector<128x128xf32>
      %c0_35 = arith.constant 0 : index
      %c0_36 = arith.constant 0 : index
      %65 = vector.load %arg11[%c0_35, %c0_36] : memref<1x128xf32, #tpu.memory_space<vmem>>, vector<1x128xf32>
      %66 = vector.broadcast %65 : vector<1x128xf32> to vector<128x128xf32>
      %67 = arith.addf %64, %66 : vector<128x128xf32>
      %c0_37 = arith.constant 0 : index
      %c0_38 = arith.constant 0 : index
      %68 = vector.load %arg12[%c0_37, %c0_38] : memref<128x128xf32, #tpu.memory_space<vmem>>, vector<128x128xf32>
      tpu.vector_store %arg12[%c0_37, %c0_38], %67 {strides = array<i32>} : memref<128x128xf32, #tpu.memory_space<vmem>>, vector<128x128xf32>,
    } else {
    }
    return
  }
  func.func @transform_0(%arg0: i32, %arg1: i32) -> (i32, i32) {
    %c0_i32 = arith.constant 0 : i32
    %c0_i32_0 = arith.constant 0 : i32
    return %c0_i32, %arg1 : i32, i32
  }
  func.func @transform_1(%arg0: i32, %arg1: i32) -> (i32, i32) {
    %c0_i32 = arith.constant 0 : i32
    %c0_i32_0 = arith.constant 0 : i32
    return %arg1, %c0_i32 : i32, i32
  }
  func.func @transform_2(%arg0: i32, %arg1: i32) -> (i32, i32) {
    %c0_i32 = arith.constant 0 : i32
    %c0_i32_0 = arith.constant 0 : i32
    %c0_i32_1 = arith.constant 0 : i32
    return %c0_i32, %c0_i32_0 : i32, i32
  }
  func.func @transform_3(%arg0: i32, %arg1: i32) -> (i32, i32) {
    %c0_i32 = arith.constant 0 : i32
    %c0_i32_0 = arith.constant 0 : i32
    %c0_i32_1 = arith.constant 0 : i32
    return %c0_i32, %c0_i32_0 : i32, i32
  }
  func.func @transform_4(%arg0: i32, %arg1: i32) -> (i32, i32) {
    %c0_i32 = arith.constant 0 : i32
    %c0_i32_0 = arith.constant 0 : i32
    %c0_i32_1 = arith.constant 0 : i32
    return %c0_i32, %c0_i32_0 : i32, i32
  }
  func.func @transform_5(%arg0: i32, %arg1: i32) -> (i32, i32) {
    %c0_i32 = arith.constant 0 : i32
    %c0_i32_0 = arith.constant 0 : i32
    %c0_i32_1 = arith.constant 0 : i32
    return %c0_i32, %c0_i32_0 : i32, i32
  }
  func.func @transform_6(%arg0: i32, %arg1: i32) -> (i32, i32) {
    %c0_i32 = arith.constant 0 : i32
    %c0_i32_0 = arith.constant 0 : i32
    %c0_i32_1 = arith.constant 0 : i32
    return %c0_i32, %c0_i32_0 : i32, i32
  }
  func.func @transform_7(%arg0: i32, %arg1: i32) -> (i32, i32) {
    %c0_i32 = arith.constant 0 : i32
    %c0_i32_0 = arith.constant 0 : i32
    %c0_i32_1 = arith.constant 0 : i32
    return %c0_i32, %c0_i32_0 : i32, i32
  }
  func.func @transform_8(%arg0: i32, %arg1: i32) -> (i32, i32) {
    %c0_i32 = arith.constant 0 : i32
    %c0_i32_0 = arith.constant 0 : i32
    %c0_i32_1 = arith.constant 0 : i32
    return %c0_i32, %c0_i32_0 : i32, i32
  }
  func.func @transform_9(%arg0: i32, %arg1: i32) -> (i32, i32) {
    %c0_i32 = arith.constant 0 : i32
    %c0_i32_0 = arith.constant 0 : i32
    %c0_i32_1 = arith.constant 0 : i32
    return %c0_i32, %c0_i32_0 : i32, i32
  }
  func.func @transform_10(%arg0: i32, %arg1: i32) -> (i32, i32) {
    %c0_i32 = arith.constant 0 : i32
    %c0_i32_0 = arith.constant 0 : i32
    return %arg0, %c0_i32 : i32, i32
  }
}

</mosaic_0001>

<bundles_post_ra>
// kernel: tpu_custom_call.1
= control target key start
LH: loop header
LB: loop body
LE: loop exit
PB: predicated region body
PF: predicated region fallthrough
CT: control target
= control target key end

     0   :  { %s4412_s0 = inlined_call_operand.hbm [shape: s32[1,640], index: 0, kind: input, shape index: {}]   ;;  %s4413_s1 = inlined_call_operand.hbm [shape: bf16[640,128], index: 1, kind: input, shape index: {}]   ;;  %s4414_s2 = inlined_call_operand.hbm [shape: bf16[128,128], index: 2, kind: input, shape index: {}]   ;;  %s4415_s3 = inlined_call_operand.vmem [shape: f32[1,128], index: 3, kind: input, shape index: {}]   ;;  %s4416_s4 = inlined_call_operand.hbm [shape: bf16[128,128], index: 4, kind: input, shape index: {}]   ;;  %s4417_s5 = inlined_call_operand.vmem [shape: f32[1,128], index: 5, kind: input, shape index: {}]   ;;  %s4418_s6 = inlined_call_operand.hbm [shape: bf16[128,128], index: 6, kind: input, shape index: {}]   ;;  %s4419_s7 = inlined_call_operand.vmem [shape: f32[1,128], index: 7, kind: input, shape index: {}]   ;;  %s4420_s8 = inlined_call_operand.hbm [shape: bf16[128,128], index: 8, kind: input, shape index: {}]   ;;  %s4421_s9 = inlined_call_operand.vmem [shape: f32[1,128], index: 9, kind: input, shape index: {}]   ;;  %s4422_s10 = inlined_call_operand.hbm [shape: f32[256,128], index: 10, kind: output, shape index: {}]  }
   0x1   :  { %4435 = sst [smem:[#allocation27_spill]] %s4414_s2 }
   0x2   :  { %4436 = sst [smem:[#allocation28_spill]] %s4415_s3 }
   0x3   :  { %4437 = sst [smem:[#allocation29_spill]] %s4416_s4 }
   0x4   :  { %4438 = sst [smem:[#allocation30_spill]] %s4417_s5 }
   0x5   :  { %4439 = sst [smem:[#allocation31_spill]] %s4418_s6 }
   0x6   :  { %4440 = sst [smem:[#allocation32_spill]] %s4419_s7 }
   0x7   :  { %4441 = sst [smem:[#allocation33_spill]] %s4421_s9 }
   0x8   :  { %4442 = sst [smem:[#allocation34_spill]] %s4422_s10 }
   0x9   :  { %15 = vsyncpa [#allocation4], 0 }
   0xa   :  { %17 = vsyncpa [#allocation4 + $0x1], 0 }
   0xb   :  { %18 = vsyncpa [#allocation7], 0 }
   0xc   :  { %20 = vsyncpa [#allocation7 + $0x1], 0 }
   0xd   :  { %21 = vsyncpa [#allocation10], 0 }
   0xe   :  { %22 = vsyncpa [#allocation13], 0 }
   0xf   :  { %23 = vsyncpa [#allocation5], 0 }
  0x10   :  { %25 = vsyncpa [#allocation5 + $0x1], 0  ;;  %s3314_s13 = smov 0   ;;  %s3316_s14 = smov 0  }
  0x11   :  { %s3318_s15 = smov 0   ;;  %s3320_s16 = smov 0  }
  0x12   :  { %s3322_s17 = smov 0   ;;  %s3324_s18 = smov 0  }
  0x13   :  { %s3326_s19 = smov 0   ;;  %s3328_s20 = smov 0  }
  0x14   :  { %s3330_s21 = smov 0   ;;  %s3332_s22 = smov 0  }
  0x15   :  { %s3334_s23 = smov 0  }
  0x16 LB: > { %4443 = sst [smem:[#allocation21_spill]] %s3204_s13  ;;  %s3370_s24 = sadd.s32 4294967295, %s3244_s23   ;;  %s3244_s23 = sphi %s3334_s23, %s31_s23   ;;  %s3240_s22 = sphi %s3332_s22, %s4548_s22   ;;  %s3236_s21 = sphi %s3330_s21, %s4547_s21   ;;  %s3232_s20 = sphi %s3328_s20, %s4546_s20   ;;  %s3228_s19 = sphi %s3326_s19, %s4545_s19   ;;  %s3224_s18 = sphi %s3324_s18, %s4544_s18   ;;  %s3220_s17 = sphi %s3322_s17, %s4543_s17   ;;  %s3216_s16 = sphi %s3320_s16, %s4542_s16   ;;  %s3212_s15 = sphi %s3318_s15, %s4541_s15   ;;  %s3208_s14 = sphi %s3316_s14, %s4540_s14   ;;  %s3204_s13 = sphi %s3314_s13, %s4539_s13  }
  0x17   : > { %4444 = sst [smem:[#allocation22_spill]] %s3208_s14  ;;  %s2219_s25 = sadd.s32 4294967294, %s3244_s23  }
  0x18   : > { %4445 = sst [smem:[#allocation23_spill]] %s3228_s19  ;;  %p4428_p0 = scmp.eq.s32.totalorder %s3370_s24, 0 }
  0x19   : > { %4446 = sst [smem:[#allocation24_spill]] %s3232_s20  ;;  %p280_p1 = scmp.ne.s32.totalorder %s3212_s15, %s3208_s14 }
  0x1a   : > { %p281_p2 = scmp.eq.s32.totalorder %s3370_s24, 9  ;;  %p286_p3 = scmp.ne.s32.totalorder %s3208_s14, %s3204_s13 }
  0x1b   : > { %p287_p4 = scmp.eq.s32.totalorder %s2219_s25, 9  ;;  %p2220_p6 = scmp.ge.s32.totalorder %s3244_s23, 1 }
  0x1c   : > { %p3380_p5 = por %p281_p2, %p280_p1  ;;  %p294_p8 = scmp.lt.s32.totalorder %s3244_s23, 11 }
  0x1d   : > { %p3385_p7 = por %p287_p4, %p286_p3  ;;  %s3246_s30 = smov [#allocation8]  }
  0x1e   : > { %s4447_s27 = scalar_select %p3380_p5, 1, 0 }
  0x1f   : > { %s4449_s28 = scalar_select %p3385_p7, 1, 0 }
  0x20   : > { %4448 = sst [smem:[#allocation25_spill]] %s4447_s27  ;;  %p3390_p9 = pnand %p2220_p6, %p294_p8 }
  0x21   : > { %4450 = sst [smem:[#allocation26_spill]] %s4449_s28  ;;  %s306_s11 = sshll.u32 %s3246_s30, 4  ;;  %s3394_s11 = int_to_ptr.vmem [resolvable:$true] %s306_s11 }
  0x22   : > { %s4451_s29 = scalar_select %p3390_p9, 1, 0 }
  0x23   : > { %p2634_p10 = pneg %p3390_p9  ;;  %s3247_s25 = smov [#allocation9]  }
  0x24   : > { %s322_s26 = sshll.u32 %s3247_s25, 4  ;;  %s3248_s28 = smov [#allocation11]   ;;  %s3404_s26 = int_to_ptr.vmem [resolvable:$true] %s322_s26 }
  0x25   : > { %p3400_p11 = pnand %p2634_p10, %p4428_p0  ;;  %s3406_s13 = sshll.u32 %s3248_s28, 4  ;;  %s339_s13 = int_to_ptr.vmem [resolvable:$true] %s3406_s13 }
  0x26   : > { %s4453_s2 = sld [smem:[#allocation27_spill]] }
  0x27   : > { %p3416_p13 = pneg %p3400_p11 }
  0x2c   : > { %s2934_s30 = scalar_lea.hbm %s4453_s2, 1024 }
  0x2d   : > { %p2935_p12 = scmp.ne.s32.totalorder %s4453_s2, %s2934_s30  ;;  %p2941_p3 = scmp.lt.u32.totalorder %s2934_s30, %s4453_s2 }
  0x2f   : > { %p2937_p1 = pnand %p3416_p13, %p2935_p12 }
  0x31   : > { %p2938_p2 = pneg %p2937_p1 }
  0x33   : > { %p2943_p4 = pnand %p2941_p3, %p2938_p2 }
  0x35   : > { %2946 = shalt.err (!%p2943_p4)
}
  0x36   : > { %s2947_s7 = scalar_lea.vmem %s3394_s11, 1024  ;;  %p2955_p0 = scmp.lt.s32.totalorder %s3394_s11, %s3394_s11 }
  0x37   : > { %p2948_p6 = scmp.ne.s32.totalorder %s3394_s11, %s2947_s7  ;;  %p2956_p7 = scmp.lt.s32.totalorder %s2947_s7, %s2947_s7 }
  0x39   : > { %p2950_p8 = pnand %p2948_p6, %p3416_p13  ;;  %p2957_p12 = por %p2956_p7, %p2955_p0 }
  0x3b   : > { %p2951_p10 = pneg %p2950_p8 }
  0x3d   : > { %p2958_p1 = pnand %p2957_p12, %p2951_p10 }
  0x3f   : > { %2961 = shalt.err (!%p2958_p1)
}
  0x40   : > { %s4433_s9 = smov 64   ;;  %s4434_s10 = smov 4  }
  0x41   : > { %2637 = dma.hbm_to_vmem [thread:$0]  (!%p3400_p11), %s4453_s2, 1024, %s3394_s11, [#allocation7], %s4433_s9, %s4433_s9, %s4434_s10  }
  0x42   : > { %s4455_s4 = sld [smem:[#allocation29_spill]] }
  0x48   : > { %s2962_s7 = scalar_lea.hbm %s4455_s4, 1024 }
  0x49   : > { %p2963_p0 = scmp.ne.s32.totalorder %s4455_s4, %s2962_s7  ;;  %p2969_p3 = scmp.lt.u32.totalorder %s2962_s7, %s4455_s4 }
  0x4b   : > { %p2965_p7 = pnand %p2963_p0, %p3416_p13 }
  0x4d   : > { %p2966_p2 = pneg %p2965_p7 }
  0x4f   : > { %p2971_p4 = pnand %p2969_p3, %p2966_p2 }
  0x51   : > { %2974 = shalt.err (!%p2971_p4)
}
  0x52   : > { %s2975_s11 = scalar_lea.vmem %s3404_s26, 1024  ;;  %p2983_p12 = scmp.lt.s32.totalorder %s3404_s26, %s3404_s26 }
  0x53   : > { %p2976_p6 = scmp.ne.s32.totalorder %s3404_s26, %s2975_s11  ;;  %p2984_p1 = scmp.lt.s32.totalorder %s2975_s11, %s2975_s11 }
  0x55   : > { %p2978_p8 = pnand %p2976_p6, %p3416_p13  ;;  %p2985_p0 = por %p2984_p1, %p2983_p12 }
  0x57   : > { %p2979_p10 = pneg %p2978_p8 }
  0x59   : > { %p2986_p7 = pnand %p2985_p0, %p2979_p10 }
  0x5b   : > { %2989 = shalt.err (!%p2986_p7)
}
  0x5c   : > { %2640 = dma.hbm_to_vmem [thread:$0]  (!%p3400_p11), %s4455_s4, 1024, %s3404_s26, [#allocation10], %s4433_s9, %s4433_s9, %s4434_s10  }
  0x5d   : > { %s4456_s6 = sld [smem:[#allocation31_spill]] }
  0x63   : > { %s2990_s27 = scalar_lea.hbm %s4456_s6, 1024 }
  0x64   : > { %p2991_p2 = scmp.ne.s32.totalorder %s4456_s6, %s2990_s27  ;;  %p2997_p6 = scmp.lt.u32.totalorder %s2990_s27, %s4456_s6 }
  0x66   : > { %p2993_p3 = pnand %p2991_p2, %p3416_p13 }
  0x68   : > { %p2994_p4 = pneg %p2993_p3 }
  0x6a   : > { %p2999_p8 = pnand %p2997_p6, %p2994_p4 }
  0x6c   : > { %3002 = shalt.err (!%p2999_p8)
}
  0x6d   : > { %s3003_s11 = scalar_lea.vmem %s339_s13, 1024  ;;  %p3011_p0 = scmp.lt.s32.totalorder %s339_s13, %s339_s13 }
  0x6e   : > { %p3004_p10 = scmp.ne.s32.totalorder %s339_s13, %s3003_s11  ;;  %p3012_p7 = scmp.lt.s32.totalorder %s3003_s11, %s3003_s11 }
  0x70   : > { %p3006_p12 = pnand %p3004_p10, %p3416_p13  ;;  %p3013_p5 = por %p3012_p7, %p3011_p0 }
  0x72   : > { %p3007_p1 = pneg %p3006_p12 }
  0x74   : > { %p3014_p9 = pnand %p3013_p5, %p3007_p1 }
  0x76   : > { %3017 = shalt.err (!%p3014_p9)
}
  0x77   : > { %2643 = dma.hbm_to_vmem [thread:$0]  (!%p3400_p11), %s4456_s6, 1024, %s339_s13, [#allocation10], %s4433_s9, %s4433_s9, %s4434_s10  }
  0x78   : > { %s3251_s14 = smov [#allocation12]   ;;  %s3018_s30 = scalar_lea.hbm %s4420_s8, 1024 }
  0x79   : > { %s354_s19 = sshll.u32 %s3251_s14, 4  ;;  %p3019_p5 = scmp.ne.s32.totalorder %s4420_s8, %s3018_s30  ;;  %s355_s19 = int_to_ptr.vmem [resolvable:$true] %s354_s19 }
  0x7a   : > { %p3025_p3 = scmp.lt.u32.totalorder %s3018_s30, %s4420_s8 }
  0x7b   : > { %p3021_p9 = pnand %p3019_p5, %p3416_p13 }
  0x7d   : > { %p3022_p2 = pneg %p3021_p9 }
  0x7f   : > { %p3027_p4 = pnand %p3025_p3, %p3022_p2 }
  0x81   : > { %3030 = shalt.err (!%p3027_p4)
}
  0x82   : > { %s3031_s13 = scalar_lea.vmem %s355_s19, 1024  ;;  %p3039_p12 = scmp.lt.s32.totalorder %s355_s19, %s355_s19 }
  0x83   : > { %p3032_p6 = scmp.ne.s32.totalorder %s355_s19, %s3031_s13  ;;  %p3040_p1 = scmp.lt.s32.totalorder %s3031_s13, %s3031_s13 }
  0x85   : > { %p3034_p8 = pnand %p3032_p6, %p3416_p13  ;;  %p3041_p0 = por %p3040_p1, %p3039_p12 }
  0x87   : > { %p3035_p10 = pneg %p3034_p8 }
  0x89   : > { %p3042_p7 = pnand %p3041_p0, %p3035_p10 }
  0x8b   : > { %3045 = shalt.err (!%p3042_p7)
}
  0x8c   : > { %2646 = dma.hbm_to_vmem [thread:$0]  (!%p3400_p11), %s4420_s8, 1024, %s355_s19, [#allocation13], %s4433_s9, %s4433_s9, %s4434_s10  }
  0x8d   : > { %s40_s5 = sadd.s32 1, %s3236_s21  ;;  %s43_s12 = sadd.s32 1, %s3240_s22 }
  0x8e   : > { %p41_p13 = scmp.ge.s32.totalorder %s40_s5, 5  ;;  %s50_s14 = sadd.s32 1, %s3224_s18 }
  0x8f   : > { %p57_p5 = scmp.ne.s32.totalorder %s3224_s18, %s3220_s17  ;;  %p58_p9 = scmp.eq.s32.totalorder %s3244_s23, 0 }
  0x90   : > { %s4550_s5 = smov (%p41_p13, %s40_s5), 0  ;;  %s4552_s12 = smov (!%p41_p13, %s43_s12), %s3240_s22 }
  0x91   : > { %s47_s20 = ssub.s32 %s3236_s21, %s4550_s5  ;;  %p3520_p2 = por %p58_p9, %p57_p5 }
  0x92   : > { %p45_p11 = scmp.ge.s32.totalorder %s4552_s12, 2  ;;  %p48_p3 = scmp.eq.s32.totalorder %s47_s20, 0 }
  0x93   : > { %p63_p4 = scmp.ne.s32.totalorder %s3220_s17, %s3216_s16  ;;  %p2662_p6 = scmp.lt.s32.totalorder %s3244_s23, 10 }
  0x94   : > { %s4554_s12 = smov (%p45_p11, %s4552_s12), 0  ;;  %p4458_p8 = scmp.eq.s32.totalorder %s3370_s24, 0 }
  0x95   : > { %s3530_s27 = scalar_select %p48_p3, %s3224_s18, %s50_s14  }
  0x96   : > { %p3534_p10 = por %p4458_p8, %p63_p4  ;;  %s267_s25 = ssub.s32 %s3240_s22, %s4554_s12 }
  0x97   : > { %p268_p12 = scmp.eq.s32.totalorder %s267_s25, 0  ;;  %s3541_s28 = sand.u32 1, %s3224_s18  }
  0x98   : > { %s4460_s7 = sadd.s32 1, %s3212_s15  ;;  %s2226_s11 = sshll.u32 %s3236_s21, 4 }
  0x99   : > { %s3546_s16 = scalar_select %p268_p12, %s3212_s15, %s4460_s7  }
  0x9a   : > { %s374_s13 = scalar_lea.vmem [#allocation3], %s3541_s28  ;;  %s3553_s20 = scalar_lea.hbm %s4412_s0, %s2226_s11 }
  0x9b   : > { %s381_s26 = sshll.u32 %s374_s13, 4  ;;  %p3561_p1 = pnand %p2662_p6, %p3520_p2  ;;  %s3555_s26 = int_to_ptr.vmem [resolvable:$true] %s381_s26 }
  0x9c   : > { %s2227_s7 = sshll.u32 %s3541_s28, 6  ;;  %s2354_s13 = sshll.u32 %s3236_s21, 10 }
  0x9d   : > { %s3567_s9 = scalar_lea.vmem [#allocation6], %s2227_s7  ;;  %s372_s3 = scalar_lea.sflag [#allocation4], %s3541_s28 }
  0x9e   : > { %s399_s11 = sshll.u32 %s3567_s9, 4  ;;  %s3046_s14 = scalar_lea.hbm %s3553_s20, 16  ;;  %s3598_s11 = int_to_ptr.vmem [resolvable:$true] %s399_s11 }
  0x9f   : > { %p3047_p0 = scmp.ne.s32.totalorder %s3553_s20, %s3046_s14  ;;  %p3048_p7 = pneg %p3561_p1 }
  0xa0   : > { %s3051_s2 = scalar_lea.hbm %s4412_s0, 80  ;;  %p3052_p9 = scmp.lt.u32.totalorder %s3553_s20, %s4412_s0 }
  0xa1   : > { %p3049_p13 = pnand %p3048_p7, %p3047_p0  ;;  %p3053_p2 = scmp.lt.u32.totalorder %s3051_s2, %s3046_s14 }
  0xa2   : > { %p3055_p3 = scmp.lt.u32.totalorder %s3046_s14, %s3553_s20 }
  0xa3   : > { %p3050_p5 = pneg %p3049_p13  ;;  %p3054_p11 = por %p3053_p2, %p3052_p9 }
  0xa5   : > { %p3056_p4 = por %p3055_p3, %p3054_p11 }
  0xa7   : > { %p3057_p6 = pnand %p3056_p4, %p3050_p5 }
  0xa9   : > { %3060 = shalt.err (!%p3057_p6)
}
  0xaa   : > { %s3061_s28 = scalar_lea.vmem %s3555_s26, 16  ;;  %s3252_s10 = smov [#allocation3]  }
  0xab   : > { %p3062_p8 = scmp.ne.s32.totalorder %s3555_s26, %s3061_s28  ;;  %s3066_s7 = sshll.u32 %s3252_s10, 4  ;;  %s3067_s7 = int_to_ptr.vmem [resolvable:$false] %s3066_s7 }
  0xac   : > { %s3068_s4 = scalar_lea.vmem %s3067_s7, 32  ;;  %p3069_p13 = scmp.lt.s32.totalorder %s3555_s26, %s3067_s7 }
  0xad   : > { %p3064_p12 = pnand %p3062_p8, %p3048_p7  ;;  %p3070_p9 = scmp.lt.s32.totalorder %s3068_s4, %s3061_s28 }
  0xaf   : > { %p3065_p0 = pneg %p3064_p12  ;;  %p3071_p2 = por %p3070_p9, %p3069_p13 }
  0xb1   : > { %p3072_p11 = pnand %p3071_p2, %p3065_p0 }
  0xb3   : > { %3075 = shalt.err (!%p3072_p11)
}
  0xb4   : > { %2650 = dma.hbm_to_vmem [thread:$0]  (!%p3561_p1), %s3553_s20, 16, %s3555_s26, %s372_s3  }
  0xb5   : > { %s388_s2 = sand.u32 1, %s3244_s23   ;;  %s3606_s19 = scalar_lea.hbm %s4413_s1, %s2354_s13 }
  0xb6   : > { %s3608_s28 = scalar_lea.sflag [#allocation7], %s388_s2  ;;  %s3076_s10 = scalar_lea.hbm %s3606_s19, 1024 }
  0xb7   : > { %p3077_p5 = scmp.ne.s32.totalorder %s3606_s19, %s3076_s10  ;;  %s3081_s20 = scalar_lea.hbm %s4413_s1, 5120 }
  0xb8   : > { %p3082_p6 = scmp.lt.u32.totalorder %s3606_s19, %s4413_s1  ;;  %p3083_p8 = scmp.lt.u32.totalorder %s3081_s20, %s3076_s10 }
  0xb9   : > { %p3079_p3 = pnand %p3077_p5, %p3048_p7  ;;  %p3085_p0 = scmp.lt.u32.totalorder %s3076_s10, %s3606_s19 }
  0xba   : > { %p3084_p12 = por %p3083_p8, %p3082_p6 }
  0xbb   : > { %p3080_p4 = pneg %p3079_p3 }
  0xbc   : > { %p3086_p13 = por %p3085_p0, %p3084_p12 }
  0xbe   : > { %p3087_p9 = pnand %p3086_p13, %p3080_p4 }
  0xc0   : > { %3090 = shalt.err (!%p3087_p9)
}
  0xc1   : > { %s3091_s13 = scalar_lea.vmem %s3598_s11, 1024  ;;  %s3253_s4 = smov [#allocation6]  }
  0xc2   : > { %p3092_p2 = scmp.ne.s32.totalorder %s3598_s11, %s3091_s13  ;;  %s3096_s2 = sshll.u32 %s3253_s4, 4  ;;  %s3097_s2 = int_to_ptr.vmem [resolvable:$false] %s3096_s2 }
  0xc3   : > { %s3098_s6 = scalar_lea.vmem %s3097_s2, 2048  ;;  %p3099_p3 = scmp.lt.s32.totalorder %s3598_s11, %s3097_s2 }
  0xc4   : > { %p3094_p11 = pnand %p3092_p2, %p3048_p7  ;;  %p3100_p6 = scmp.lt.s32.totalorder %s3098_s6, %s3091_s13 }
  0xc6   : > { %p3095_p5 = pneg %p3094_p11  ;;  %p3101_p8 = por %p3100_p6, %p3099_p3 }
  0xc8   : > { %p3102_p12 = pnand %p3101_p8, %p3095_p5 }
  0xca   : > { %3105 = shalt.err (!%p3102_p12)
}
  0xcb   : > { %s4462_s14 = smov 4   ;;  %s4463_s10 = smov 64  }
  0xcc   : > { %2653 = dma.hbm_to_vmem [thread:$0]  (!%p3561_p1), %s3606_s19, 1024, %s3598_s11, %s3608_s28, %s4463_s10, %s4463_s10, %s4462_s14  }
  0xcd   : > { %p4464_p7 = scmp.ne.s32.totalorder %s4451_s29, 0 }
  0xce   : > { %s3640_s9 = sand.u32 (!%p4464_p7), 1, %s3220_s17  }
  0xcf   : > { %411 = sbr.rel (%p4464_p7) target bundleno = 1597 (0x63d), region = 60  ;;  %s414_s26 = scalar_lea.sflag (!%p4464_p7), [#allocation4], %s3640_s9 }
  0xd0   : > { %s416_s20 = scalar_lea.vmem (!%p4464_p7), [#allocation3], %s3640_s9 }
  0xd6   : > { %3179 = dma.done.wait (%p3534_p10), %s414_s26, 16  }
  0xd7   : > { %3181 = vsyncadd (%p3534_p10), %s414_s26, 4294967280  ;;  %s421_s25 = sand.u32 1, %s3370_s24   ;;  %s2231_s11 = sshll.u32 %s3640_s9, 6 }
  0xd8   : > { %s422_s29 = scalar_lea.sflag [#allocation7], %s421_s25  ;;  %s3650_s19 = scalar_lea.vmem [#allocation6], %s2231_s11 }
  0xd9   : > { %3183 = dma.done.wait (%p3534_p10), %s422_s29, 1024  }
  0xda   : > { %3185 = vsyncadd (%p3534_p10), %s422_s29, 4294966272  ;;  %p4465_p1 = scmp.eq.s32.totalorder %s3370_s24, 0 }
  0xdc   : > { %3187 = dma.done.wait (%p4465_p1), [#allocation7], 1024   ;;  %p4466_p4 = pmov %p4465_p1 }
  0xdd   : > { %p4467_p0 = pmov %p4465_p1 }
  0xde   : > { %3189 = vsyncadd (%p4466_p4), [#allocation7], 4294966272 }
  0xdf   : > { %3191 = dma.done.wait (%p4467_p0), [#allocation10], 2048   ;;  %p4468_p13 = pmov %p4467_p0 }
  0xe0   : > { %p4469_p9 = pmov %p4467_p0 }
  0xe1   : > { %3193 = vsyncadd (%p4468_p13), [#allocation10], 4294965248 }
  0xe2   : > { %3195 = dma.done.wait (%p4469_p9), [#allocation13], 1024   ;;  %p4470_p2 = pmov %p4467_p0 }
  0xe3   : > { %s4471_s30 = sld [smem:[#allocation22_spill]]  ;;  %s4472_s13 = sld [smem:[#allocation23_spill]] }
  0xe4   : > { %3197 = vsyncadd (%p4470_p2), [#allocation13], 4294966272 }
  0xe9   : > { %s479_s28 = sand.u32 1, %s4471_s30   ;;  %p2237_p10 = scmp.ne.s32.totalorder %s4472_s13, 0 }
  0xea   : > { %s2236_s3 = sshll.u32 %s479_s28, 7  ;;  %v3254_v0 = vmov (!%p2237_p10), 0.0  }
  0xeb   : > { %s3671_s7 = scalar_lea.vmem [#allocation14], %s2236_s3  ;;  %488 = sbr.rel (%p2237_p10) target bundleno = 243 (0xf3), region = 88  ;;  %489 = vst [vmem:[#allocation2] sm:$0xff] (!%p2237_p10), %v3254_v0  ;;  %490 = vst [vmem:[#allocation2 + $0x8] sm:$0xff] (!%p2237_p10), %v3254_v0 }
  0xec   : > { %491 = vst [vmem:[#allocation2 + $0x10] sm:$0xff] (!%p2237_p10), %v3254_v0  ;;  %492 = vst [vmem:[#allocation2 + $0x18] sm:$0xff] (!%p2237_p10), %v3254_v0 }
  0xed   : > { %493 = vst [vmem:[#allocation2 + $0x20] sm:$0xff] (!%p2237_p10), %v3254_v0  ;;  %494 = vst [vmem:[#allocation2 + $0x28] sm:$0xff] (!%p2237_p10), %v3254_v0 }
  0xee   : > { %495 = vst [vmem:[#allocation2 + $0x30] sm:$0xff] (!%p2237_p10), %v3254_v0  ;;  %496 = vst [vmem:[#allocation2 + $0x38] sm:$0xff] (!%p2237_p10), %v3254_v0 }
  0xef   : > { %497 = vst [vmem:[#allocation2 + $0x40] sm:$0xff] (!%p2237_p10), %v3254_v0  ;;  %498 = vst [vmem:[#allocation2 + $0x48] sm:$0xff] (!%p2237_p10), %v3254_v0 }
  0xf0   : > { %499 = vst [vmem:[#allocation2 + $0x50] sm:$0xff] (!%p2237_p10), %v3254_v0  ;;  %500 = vst [vmem:[#allocation2 + $0x58] sm:$0xff] (!%p2237_p10), %v3254_v0 }
  0xf1   : > { %501 = vst [vmem:[#allocation2 + $0x60] sm:$0xff] (!%p2237_p10), %v3254_v0  ;;  %502 = vst [vmem:[#allocation2 + $0x68] sm:$0xff] (!%p2237_p10), %v3254_v0 }
  0xf2   : > { %503 = vst [vmem:[#allocation2 + $0x70] sm:$0xff] %v3254_v0  ;;  %504 = vst [vmem:[#allocation2 + $0x78] sm:$0xff] %v3254_v0 }
  0xf3 PF: > { %v2766_v1 = vld [vmem:[#allocation8] sm:$0xff]   ;;  %v2767_v2 = vld [vmem:[#allocation8 + $0x8] sm:$0xff]   ;;  %v2768_v3 = vld [vmem:[#allocation8 + $0x10] sm:$0xff]   ;;  %s4473_s2 = sld [smem:[#allocation28_spill]]  ;;  %s4494_s6 = sld [smem:[#allocation24_spill]] }
  0xf4   : > { %2436 = vmatprep.subr.bf16.mxu0 %v2766_v1  ;;  %v2769_v4 = vld [vmem:[#allocation8 + $0x18] sm:$0xff]   ;;  %v2774_v5 = vld [vmem:[%s3650_s19] sm:$0xff]   ;;  %v2771_v7 = vld [vmem:[#allocation8 + $0x28] sm:$0xff]   ;;  %s4507_s26 = sld [smem:[#allocation30_spill]] }
  0xf5   : > { %2437 = vmatpush3.bf16.msra.mxu0 %v2766_v1  ;;  %2452 = vmatprep.mubr.bf16.mxu0 %v2774_v5  ;;  %v2770_v6 = vld [vmem:[#allocation8 + $0x20] sm:$0xff]   ;;  %v2772_v8 = vld [vmem:[#allocation8 + $0x30] sm:$0xff]   ;;  %v2773_v9 = vld [vmem:[#allocation8 + $0x38] sm:$0xff]  }
  0xf6   : > { %2438 = vmatprep.subr.bf16.mxu0 %v2767_v2  ;;  %v2775_v10 = vld [vmem:[%s3650_s19 + $0x8] sm:$0xff]   ;;  %v2776_v11 = vld [vmem:[%s3650_s19 + $0x10] sm:$0xff]   ;;  %v2777_v12 = vld [vmem:[%s3650_s19 + $0x18] sm:$0xff]  }
  0xf7   : > { %v2778_v13 = vld [vmem:[%s3650_s19 + $0x20] sm:$0xff]   ;;  %v2779_v14 = vld [vmem:[%s3650_s19 + $0x28] sm:$0xff]   ;;  %v2780_v15 = vld [vmem:[%s3650_s19 + $0x30] sm:$0xff]  }
  0xf8   : > { %v2781_v16 = vld [vmem:[%s3650_s19 + $0x38] sm:$0xff]   ;;  %v2782_v17 = vld [vmem:[#allocation9] sm:$0xff]   ;;  %v2783_v18 = vld [vmem:[#allocation9 + $0x8] sm:$0xff]  }
  0xf9   : > { %2439 = vmatpush3.bf16.msra.mxu0 %v2767_v2  ;;  %2468 = vmatprep.subr.bf16.mxu1 %v2782_v17  ;;  %v2784_v19 = vld [vmem:[#allocation9 + $0x10] sm:$0xff]   ;;  %v2785_v20 = vld [vmem:[#allocation9 + $0x18] sm:$0xff]   ;;  %v2786_v21 = vld [vmem:[#allocation9 + $0x20] sm:$0xff]   ;;  %s2280_s14 = sshll.u32 %s4494_s6, 7 }
  0xfa   : > { %2440 = vmatprep.subr.bf16.mxu0 %v2768_v3  ;;  %2469 = vmatpush3.bf16.msra.mxu1 %v2782_v17  ;;  %v2787_v22 = vld [vmem:[#allocation9 + $0x28] sm:$0xff]   ;;  %v2788_v23 = vld [vmem:[#allocation9 + $0x30] sm:$0xff]   ;;  %v2789_v24 = vld [vmem:[#allocation9 + $0x38] sm:$0xff]  }
  0xfb   : > { %2470 = vmatprep.subr.bf16.mxu1 %v2783_v18  ;;  %v3685_v25 = vld [vmem:[%s4473_s2] ss:$0 sm:$0xff] }
  0xfd   : > { %2441 = vmatpush3.bf16.msra.mxu0 %v2768_v3 }
  0xfe   : > { %2442 = vmatprep.subr.bf16.mxu0 %v2769_v4  ;;  %2471 = vmatpush3.bf16.msra.mxu1 %v2783_v18 }
  0xff   : > { %2472 = vmatprep.subr.bf16.mxu1 %v2784_v19 }
 0x101   : > { %2443 = vmatpush3.bf16.msra.mxu0 %v2769_v4 }
 0x102   : > { %2444 = vmatprep.subr.bf16.mxu0 %v2770_v6  ;;  %2473 = vmatpush3.bf16.msra.mxu1 %v2784_v19 }
 0x103   : > { %2474 = vmatprep.subr.bf16.mxu1 %v2785_v20 }
 0x105   : > { %2445 = vmatpush3.bf16.msra.mxu0 %v2770_v6 }
 0x106   : > { %2446 = vmatprep.subr.bf16.mxu0 %v2771_v7  ;;  %2475 = vmatpush3.bf16.msra.mxu1 %v2785_v20 }
 0x107   : > { %2476 = vmatprep.subr.bf16.mxu1 %v2786_v21 }
 0x109   : > { %2447 = vmatpush3.bf16.msra.mxu0 %v2771_v7 }
 0x10a   : > { %2448 = vmatprep.subr.bf16.mxu0 %v2772_v8  ;;  %2477 = vmatpush3.bf16.msra.mxu1 %v2786_v21 }
 0x10b   : > { %2478 = vmatprep.subr.bf16.mxu1 %v2787_v22 }
 0x10d   : > { %2449 = vmatpush3.bf16.msra.mxu0 %v2772_v8 }
 0x10e   : > { %2450 = vmatprep.subr.bf16.mxu0 %v2773_v9  ;;  %2479 = vmatpush3.bf16.msra.mxu1 %v2787_v22 }
 0x10f   : > { %2480 = vmatprep.subr.bf16.mxu1 %v2788_v23 }
 0x111   : > { %2451 = vmatpush3.bf16.msra.mxu0 %v2773_v9 }
 0x112   : > { %2481 = vmatpush3.bf16.msra.mxu1 %v2788_v23 }
 0x113   : > { %2482 = vmatprep.subr.bf16.mxu1 %v2789_v24 }
 0x114   : > { %2453 = vmatmul.mubr.bf16.vlgmr.msra.gmra.mrb[0].mxu0 %v2775_v10 }
 0x115   : > { %2456 = vmatprep.mubr.bf16.mxu0 %v2776_v11 }
 0x116   : > { %2483 = vmatpush3.bf16.msra.mxu1 %v2789_v24 }
 0x11c   : > { %2457 = vmatmul.mubr.bf16.gmra.mrb[4].mxu0 %v2777_v12 }
 0x11d   : > { %2460 = vmatprep.mubr.bf16.mxu0 %v2778_v13 }
 0x124   : > { %2461 = vmatmul.mubr.bf16.gmra.mrb[8].mxu0 %v2779_v14 }
 0x125   : > { %2464 = vmatprep.mubr.bf16.mxu0 %v2780_v15 }
 0x12c   : > { %2465 = vmatmul.mubr.bf16.gmra.mrb[12].mxu0 %v2781_v16 }
 0x1e7   : > { %v2454_v26 = vpop.f32.mrb[0].mxu0 }
 0x1e8   : > { %v3688_v27 = vadd.f32 %v2454_v26, %v3685_v25  ;;  %v674_v28 = vpop.f32.mrb[1].mxu0 }
 0x1e9   : > { %v2455_v29 = vpop.f32.mrb[2].mxu0  ;;  %v3699_v41 = vadd.f32 %v3685_v25, %v674_v28 }
 0x1ea   : > { %v755_v30 = vand.u32 2147483647, %v3688_v27  ;;  %v3692_v31 = vadd.f32 %v2455_v29, %v3685_v25  ;;  %v677_v32 = vpop.f32.mrb[3].mxu0  ;;  %v739_v23 = vmax.f32 %v3688_v27, 0.0 }
 0x1eb   : > { %v3709_v47 = vadd.f32 %v3685_v25, %v677_v32  ;;  %v753_v52 = vand.u32 2147483647, %v3699_v41  ;;  %v737_v29 = vmax.f32 %v3699_v41, 0.0 }
 0x1ec   : > { %v771_v33 = vsub.f32 0.0, %v755_v30  ;;  %v756_v34 = vand.u32 2147483647, %v3692_v31  ;;  %v740_v30 = vmax.f32 %v3692_v31, 0.0 }
 0x1ed   : > { %v754_v57 = vand.u32 2147483647, %v3709_v47  ;;  %v769_v0 = vsub.f32 0.0, %v753_v52 }
 0x1ee   : > { %v789_v35 = vmul.f32 1.442695, %v771_v33  ;;  %v772_v36 = vsub.f32 0.0, %v756_v34  ;;  %v738_v34 = vmax.f32 %v3709_v47, 0.0 }
 0x1ef   : > { %v2458_v37 = vpop.f32.mrb[4].mxu0  ;;  %v770_v8 = vsub.f32 0.0, %v754_v57  ;;  %v785_v13 = vmul.f32 1.442695, %v769_v0 }
 0x1f0   : > { %2790 = vpow2.f32 %v789_v35  ;;  %v791_v38 = vmul.f32 1.442695, %v772_v36  ;;  %v3696_v39 = vadd.f32 %v2458_v37, %v3685_v25  ;;  %v690_v40 = vpop.f32.mrb[5].mxu0 }
 0x1f1   : > { %v3702_v42 = vadd.f32 %v3685_v25, %v690_v40  ;;  %v2459_v43 = vpop.f32.mrb[6].mxu0  ;;  %v787_v17 = vmul.f32 1.442695, %v770_v8 }
 0x1f2   : > { %2792 = vpow2.f32 %v791_v38  ;;  %v759_v44 = vand.u32 2147483647, %v3696_v39  ;;  %v3706_v45 = vadd.f32 %v2459_v43, %v3685_v25  ;;  %v693_v46 = vpop.f32.mrb[7].mxu0  ;;  %v743_v38 = vmax.f32 %v3696_v39, 0.0 }
 0x1f3   : > { %v757_v48 = vand.u32 2147483647, %v3702_v42  ;;  %v3713_v49 = vadd.f32 %v3685_v25, %v693_v46 }
 0x1f4   : > { %v775_v50 = vsub.f32 0.0, %v759_v44  ;;  %v760_v51 = vand.u32 2147483647, %v3706_v45 }
 0x1f5   : > { %v773_v53 = vsub.f32 0.0, %v757_v48  ;;  %v758_v54 = vand.u32 2147483647, %v3713_v49  ;;  %v741_v48 = vmax.f32 %v3702_v42, 0.0 }
 0x1f6   : > { %v797_v55 = vmul.f32 1.442695, %v775_v50  ;;  %v776_v56 = vsub.f32 0.0, %v760_v51 }
 0x1f7   : > { %v793_v58 = vmul.f32 1.442695, %v773_v53  ;;  %v774_v59 = vsub.f32 0.0, %v758_v54  ;;  %v2462_v60 = vpop.f32.mrb[8].mxu0 }
 0x1f8   : > { %2794 = vpow2.f32 %v797_v55  ;;  %v799_v61 = vmul.f32 1.442695, %v776_v56  ;;  %v3720_v62 = vadd.f32 %v2462_v60, %v3685_v25  ;;  %v706_v63 = vpop.f32.mrb[9].mxu0  ;;  %v742_v60 = vmax.f32 %v3713_v49, 0.0 }
 0x1f9   : > { %2796 = vpow2.f32 %v793_v58  ;;  %v795_v1 = vmul.f32 1.442695, %v774_v59  ;;  %v3723_v2 = vadd.f32 %v3685_v25, %v706_v63  ;;  %v2463_v3 = vpop.f32.mrb[10].mxu0  ;;  %v744_v59 = vmax.f32 %v3706_v45, 0.0 }
 0x1fa   : > { %v3725_v4 = vpop.eup %2790  ;;  %2798 = vpow2.f32 %v799_v61  ;;  %v763_v5 = vand.u32 2147483647, %v3720_v62  ;;  %v709_v6 = vpop.f32.mrb[11].mxu0  ;;  %v3733_v12 = vadd.f32 %v2463_v3, %v3685_v25  ;;  %v747_v0 = vmax.f32 %v3720_v62, 0.0 }
 0x1fb   : > { %v835_v7 = vadd.f32 1.0, %v3725_v4  ;;  %2800 = vpow2.f32 %v795_v1  ;;  %v761_v11 = vand.u32 2147483647, %v3723_v2  ;;  %v3737_v18 = vadd.f32 %v3685_v25, %v709_v6 }
 0x1fc   : > { %v3729_v9 = vpop.eup %2792  ;;  %v779_v10 = vsub.f32 0.0, %v763_v5  ;;  %v764_v21 = vand.u32 2147483647, %v3733_v12  ;;  %v838_v28 = vmul.f32 -0.5, %v3725_v4  ;;  %v841_v52 = vand.u32 2147483647, %v3725_v4 }
 0x1fd   : > { %2802 = vlog2.f32 %v835_v7  ;;  %v777_v15 = vsub.f32 0.0, %v761_v11  ;;  %v844_v16 = vadd.f32 1.0, %v3729_v9  ;;  %v762_v36 = vand.u32 2147483647, %v3737_v18 }
 0x1fe   : > { %v805_v14 = vmul.f32 1.442695, %v779_v10  ;;  %v780_v43 = vsub.f32 0.0, %v764_v21  ;;  %v847_v46 = vmul.f32 -0.5, %v3729_v9  ;;  %v839_v51 = vadd.f32 1.0, %v838_v28 }
 0x1ff   : > { %v2466_v19 = vpop.f32.mrb[12].mxu0  ;;  %v801_v20 = vmul.f32 1.442695, %v777_v15  ;;  %v850_v53 = vand.u32 2147483647, %v3729_v9  ;;  %v778_v57 = vsub.f32 0.0, %v762_v36 }
 0x200   : > { %2804 = vpow2.f32 %v805_v14  ;;  %v722_v22 = vpop.f32.mrb[13].mxu0  ;;  %v807_v61 = vmul.f32 1.442695, %v780_v43  ;;  %v848_v63 = vadd.f32 1.0, %v847_v46  ;;  %v745_v1 = vmax.f32 %v3723_v2, 0.0 }
 0x201   : > { %2806 = vpow2.f32 %v785_v13  ;;  %v3741_v24 = vpop.f32.mrb[14].mxu0  ;;  %v840_v6 = vmul.f32 %v3725_v4, %v839_v51  ;;  %vm3776_vm0 = vcmp.lt.f32.partialorder %v841_v52, 0.0004427343  ;;  %vm3783_vm1 = vcmp.lt.f32.partialorder %v850_v53, 0.0004427343 }
 0x202   : > { %v3743_v26 = vpop.eup %2794  ;;  %2808 = vpow2.f32 %v801_v20  ;;  %v3748_v32 = vpop.f32.mrb[15].mxu0  ;;  %v3793_v21 = vadd.f32 %v2466_v19, %v3685_v25  ;;  %v3799_v43 = vadd.f32 %v3685_v25, %v722_v22 }
 0x203   : > { %v3750_v33 = vpop.eup %2796  ;;  %2810 = vlog2.f32 %v844_v16  ;;  %v871_v35 = vadd.f32 1.0, %v3743_v26  ;;  %v874_v55 = vmul.f32 -0.5, %v3743_v26  ;;  %v877_v8 = vand.u32 2147483647, %v3743_v26 }
 0x204   : > { %v3755_v37 = vpop.eup %2798  ;;  %2812 = vpow2.f32 %v787_v17  ;;  %v853_v40 = vadd.f32 1.0, %v3750_v33  ;;  %v856_v58 = vmul.f32 -0.5, %v3750_v33  ;;  %v859_v14 = vand.u32 2147483647, %v3750_v33 }
 0x205   : > { %v3759_v44 = vpop.eup %2800  ;;  %2814 = vlog2.f32 %v871_v35  ;;  %v880_v50 = vadd.f32 1.0, %v3755_v37  ;;  %v875_v13 = vadd.f32 1.0, %v874_v55  ;;  %v883_v15 = vmul.f32 -0.5, %v3755_v37 }
 0x206   : > { %2816 = vlog2.f32 %v853_v40  ;;  %v862_v56 = vadd.f32 1.0, %v3759_v44  ;;  %v803_v16 = vmul.f32 1.442695, %v778_v57  ;;  %v857_v4 = vadd.f32 1.0, %v856_v58 }
 0x207   : > { %v2803_v54 = vpop.eup %2802  ;;  %2818 = vlog2.f32 %v880_v50  ;;  %v886_v20 = vand.u32 2147483647, %v3755_v37  ;;  %v849_v35 = vmul.f32 %v3729_v9, %v848_v63  ;;  %v865_v36 = vmul.f32 -0.5, %v3759_v44 }
 0x208   : > { %2820 = vlog2.f32 %v862_v56  ;;  %v837_v5 = vmul.f32 0.6931472, %v2803_v54  ;;  %vm3805_vm2 = vcmp.lt.f32.partialorder %v877_v8, 0.0004427343  ;;  %v3812_v9 = vadd.f32 %v3741_v24, %v3685_v25 }
 0x209   : > { %2822 = vpow2.f32 %v807_v61  ;;  %v876_v53 = vmul.f32 %v3743_v26, %v875_v13  ;;  %vm3815_vm3 = vcmp.lt.f32.partialorder %v859_v14, 0.0004427343  ;;  %v884_v54 = vadd.f32 1.0, %v883_v15 }
 0x20a   : > { %v3773_v3 = vpop.eup %2804  ;;  %v843_v50 = vsel %vm3776_vm0, %v840_v6, %v837_v5  ;;  %2824 = vpow2.f32 %v803_v16  ;;  %v858_v57 = vmul.f32 %v3750_v33, %v857_v4  ;;  %vm3820_vm4 = vcmp.lt.f32.partialorder %v886_v20, 0.0004427343 }
 0x20b   : > { %v3781_v10 = vpop.eup %2806  ;;  %v907_v40 = vadd.f32 1.0, %v3773_v3  ;;  %v868_v24 = vand.u32 2147483647, %v3759_v44  ;;  %v963_v26 = vadd.f32 %v843_v50, %v739_v23  ;;  %v866_v63 = vadd.f32 1.0, %v865_v36 }
 0x20c   : > { %v3789_v17 = vpop.eup %2808  ;;  %v767_v5 = vand.u32 2147483647, %v3793_v21  ;;  %v765_v8 = vand.u32 2147483647, %v3799_v43  ;;  %v885_v13 = vmul.f32 %v3755_v37, %v884_v54  ;;  %v910_v14 = vmul.f32 -0.5, %v3773_v3 }
 0x20d   : > { %v2811_v28 = vpop.eup %2810  ;;  %v889_v19 = vadd.f32 1.0, %v3789_v17  ;;  %2826 = vlog2.f32 %v907_v40  ;;  %v768_v16 = vand.u32 2147483647, %v3812_v9  ;;  %vm3834_vm5 = vcmp.lt.f32.partialorder %v868_v24, 0.0004427343 }
 0x20e   : > { %v3801_v46 = vpop.eup %2812  ;;  %v846_v56 = vmul.f32 0.6931472, %v2811_v28  ;;  %v783_v15 = vsub.f32 0.0, %v767_v5  ;;  %v867_v28 = vmul.f32 %v3759_v44, %v866_v63  ;;  %v913_v36 = vand.u32 2147483647, %v3773_v3 }
 0x20f   : > { %v2815_v52 = vpop.eup %2814  ;;  %2828 = vlog2.f32 %v889_v19  ;;  %v781_v37 = vsub.f32 0.0, %v765_v8  ;;  %v3842_v19 = vadd.f32 -0.6931472, %v963_v26  ;;  %v3858_v51 = vadd.f32 %v3685_v25, %v3748_v32 }
 0x210   : > { %v2817_v55 = vpop.eup %2816  ;;  %v873_v6 = vmul.f32 0.6931472, %v2815_v52  ;;  %v852_v27 = vsel %vm3783_vm1, %v849_v35, %v846_v56  ;;  %v813_v40 = vmul.f32 1.442695, %v783_v15  ;;  %v784_v52 = vsub.f32 0.0, %v768_v16 }
 0x211   : > { %v2819_v61 = vpop.eup %2818  ;;  %v855_v23 = vmul.f32 0.6931472, %v2817_v55  ;;  %v964_v54 = vadd.f32 %v852_v27, %v740_v30  ;;  %v911_v55 = vadd.f32 1.0, %v910_v14  ;;  %v809_v58 = vmul.f32 1.442695, %v781_v37 }
 0x212   : > { %v882_v7 = vmul.f32 0.6931472, %v2819_v61  ;;  %v2821_v33 = vpop.eup %2820  ;;  %v879_v11 = vsel %vm3805_vm2, %v876_v53, %v873_v6  ;;  %v892_v61 = vmul.f32 -0.5, %v3789_v17  ;;  %2830 = vpow2.f32 %v813_v40 }
 0x213   : > { %v864_v4 = vmul.f32 0.6931472, %v2821_v33  ;;  %v3840_v50 = vpop.eup %2822  ;;  %v861_v24 = vsel %vm3815_vm3, %v858_v57, %v855_v23  ;;  %v967_v31 = vadd.f32 %v879_v11, %v743_v38  ;;  %vm3868_vm6 = vcmp.lt.f32.partialorder %v913_v36, 0.0004427343 }
 0x214   : > { %v888_v35 = vsel %vm3820_vm4, %v885_v13, %v882_v7  ;;  %v916_v56 = vadd.f32 1.0, %v3840_v50  ;;  %v3860_v53 = vpop.eup %2824  ;;  %v815_v32 = vmul.f32 1.442695, %v784_v52  ;;  %v3873_v63 = vadd.f32 -0.6931472, %v964_v54 }
 0x215   : > { %v870_v44 = vsel %vm3834_vm5, %v867_v28, %v864_v4  ;;  %v968_v30 = vadd.f32 %v888_v35, %v744_v59  ;;  %v898_v25 = vadd.f32 1.0, %v3860_v53  ;;  %v965_v39 = vadd.f32 %v861_v24, %v741_v48 }
 0x216   : > { %2832 = vlog2.f32 %v916_v56  ;;  %v966_v22 = vadd.f32 %v870_v44, %v742_v60  ;;  %v912_v45 = vmul.f32 %v3773_v3, %v911_v55  ;;  %v895_v38 = vand.u32 2147483647, %v3789_v17 }
 0x217   : > { %v2827_v26 = vpop.eup %2826  ;;  %v919_v49 = vmul.f32 -0.5, %v3840_v50  ;;  %2834 = vlog2.f32 %v898_v25  ;;  %v766_v60 = vand.u32 2147483647, %v3858_v51  ;;  %v817_v5 = vadd.f32 1.0, %v3781_v10 }
 0x218   : > { %v3882_v6 = vadd.f32 -0.6931472, %v967_v31  ;;  %v3884_v7 = vadd.f32 -0.6931472, %v968_v30  ;;  %v893_v8 = vadd.f32 1.0, %v892_v61  ;;  %2836 = vpow2.f32 %v809_v58 }
 0x219   : > { %v2829_v59 = vpop.eup %2828  ;;  %v3886_v42 = vadd.f32 -0.6931472, %v966_v22  ;;  %v901_v48 = vmul.f32 -0.5, %v3860_v53  ;;  %2838 = vpow2.f32 %v815_v32  ;;  %v782_v3 = vsub.f32 0.0, %v766_v60 }
 0x21a   : > { %v909_v33 = vmul.f32 0.6931472, %v2827_v26  ;;  %v891_v13 = vmul.f32 0.6931472, %v2829_v59  ;;  %2840 = vlog2.f32 %v817_v5  ;;  %v826_v14 = vadd.f32 1.0, %v3801_v46 }
 0x21b   : > { %v3890_v15 = vadd.f32 -0.6931472, %v965_v39  ;;  %v920_v16 = vadd.f32 1.0, %v919_v49  ;;  %v811_v27 = vmul.f32 1.442695, %v782_v3  ;;  %v994_v23 = vpack.c.bf16 %v3873_v63, %v3842_v19 }
 0x21c   : > { %v894_v4 = vmul.f32 %v3789_v17, %v893_v8  ;;  %vm3895_vm7 = vcmp.lt.f32.partialorder %v895_v38, 0.0004427343  ;;  %v922_v28 = vand.u32 2147483647, %v3840_v50  ;;  %2842 = vlog2.f32 %v826_v14  ;;  %v3900_v36 = vpop.eup %2830 }
 0x21d   : > { %v902_v40 = vadd.f32 1.0, %v901_v48  ;;  %2844 = vpow2.f32 %v811_v27  ;;  %v995_v37 = vpack.c.bf16 %v3886_v42, %v3890_v15  ;;  %v996_v11 = vpack.c.bf16 %v3884_v7, %v3882_v6 }
 0x21e   : > { %v915_v17 = vsel %vm3868_vm6, %v912_v45, %v909_v33  ;;  %v897_v52 = vsel %vm3895_vm7, %v894_v4, %v891_v13  ;;  %v943_v54 = vadd.f32 1.0, %v3900_v36  ;;  %v820_v44 = vmul.f32 -0.5, %v3781_v10 }
 0x21f   : > { %v921_v56 = vmul.f32 %v3840_v50, %v920_v16  ;;  %v904_v24 = vand.u32 2147483647, %v3860_v53  ;;  %v829_v61 = vmul.f32 -0.5, %v3801_v46  ;;  %v748_v31 = vmax.f32 %v3733_v12, 0.0 }
 0x220   : > { %v2833_v35 = vpop.eup %2832  ;;  %vm923_vm8 = vcmp.lt.f32.partialorder %v922_v28, 0.0004427343  ;;  %v746_v30 = vmax.f32 %v3737_v18, 0.0  ;;  %2846 = vlog2.f32 %v943_v54  ;;  %v971_v22 = vadd.f32 %v915_v17, %v747_v0 }
 0x221   : > { %v918_v55 = vmul.f32 0.6931472, %v2833_v35  ;;  %v2835_v58 = vpop.eup %2834  ;;  %v969_v57 = vadd.f32 %v897_v52, %v745_v1  ;;  %v903_v50 = vmul.f32 %v3860_v53, %v902_v40  ;;  %v821_v45 = vadd.f32 1.0, %v820_v44 }
 0x222   : > { %v3922_v32 = vpop.eup %2836  ;;  %v900_v39 = vmul.f32 0.6931472, %v2835_v58  ;;  %v823_v12 = vand.u32 2147483647, %v3781_v10  ;;  %vm905_vm9 = vcmp.lt.f32.partialorder %v904_v24, 0.0004427343 }
 0x223   : > { %v924_v25 = vsel %vm923_vm8, %v921_v56, %v918_v55  ;;  %v2839_v38 = vpop.eup %2838  ;;  %v925_v18 = vadd.f32 1.0, %v3922_v32  ;;  %v830_v59 = vadd.f32 1.0, %v829_v61  ;;  %v832_v62 = vand.u32 2147483647, %v3801_v46 }
 0x224   : > { %v972_v26 = vadd.f32 %v924_v25, %v748_v31  ;;  %v2841_v0 = vpop.eup %2840  ;;  %v906_v1 = vsel %vm905_vm9, %v903_v50, %v900_v39  ;;  %v946_v53 = vmul.f32 -0.5, %v3900_v36  ;;  %v952_v49 = vadd.f32 1.0, %v2839_v38 }
 0x225   : > { %v3930_v60 = vadd.f32 -0.6931472, %v971_v22  ;;  %v3932_v5 = vadd.f32 -0.6931472, %v969_v57  ;;  %v970_v8 = vadd.f32 %v906_v1, %v746_v30  ;;  %2848 = vlog2.f32 %v925_v18 }
 0x226   : > { %v3927_v2 = vadd.f32 -0.6931472, %v972_v26  ;;  %v2843_v48 = vpop.eup %2842  ;;  %2850 = vlog2.f32 %v952_v49  ;;  %v819_v3 = vmul.f32 0.6931472, %v2841_v0  ;;  %v822_v33 = vmul.f32 %v3781_v10, %v821_v45 }
 0x227   : > { %vm3935_vm10 = vcmp.lt.f32.partialorder %v823_v12, 0.0004427343  ;;  %v2845_v14 = vpop.eup %2844  ;;  %v3939_v16 = vadd.f32 -0.6931472, %v970_v8  ;;  %v828_v27 = vmul.f32 0.6931472, %v2843_v48  ;;  %v831_v4 = vmul.f32 %v3801_v46, %v830_v59 }
 0x228   : > { %v998_v20 = vpack.c.bf16 %v3927_v2, %v3930_v60  ;;  %v947_v28 = vadd.f32 1.0, %v946_v53  ;;  %v928_v40 = vmul.f32 -0.5, %v3922_v32  ;;  %v934_v35 = vadd.f32 1.0, %v2845_v14 }
 0x229   : > { %vm833_vm11 = vcmp.lt.f32.partialorder %v832_v62, 0.0004427343  ;;  %v955_v17 = vmul.f32 -0.5, %v2839_v38  ;;  %v825_v10 = vsel %vm3935_vm10, %v822_v33, %v819_v3  ;;  %v997_v54 = vpack.c.bf16 %v3939_v16, %v3932_v5  ;;  %v2281_v16 = vld [vmem:[%s416_s20] ss:$0 sm:$0xff]  ;;  %s4508_s20 = sld [smem:[#allocation23_spill]] }
 0x22a   : > { %v834_v52 = vsel %vm833_vm11, %v831_v4, %v828_v27  ;;  %v2847_v44 = vpop.eup %2846  ;;  %v949_v55 = vand.u32 2147483647, %v3900_v36  ;;  %2852 = vlog2.f32 %v934_v35  ;;  %v961_v46 = vadd.f32 %v825_v10, %v737_v29 }
 0x22b   : > { %v962_v56 = vadd.f32 %v834_v52, %v738_v34  ;;  %v945_v24 = vmul.f32 0.6931472, %v2847_v44  ;;  %v948_v30 = vmul.f32 %v3900_v36, %v947_v28  ;;  %v929_v58 = vadd.f32 1.0, %v928_v40 }
 0x22c   : > { %v2255_v61 = vadd.f32 -0.6931472, %v961_v46  ;;  %v956_v22 = vadd.f32 1.0, %v955_v17  ;;  %v937_v57 = vmul.f32 -0.5, %v2845_v14  ;;  %vm3955_vm12 = vcmp.lt.f32.partialorder %v949_v55, 0.0004427343 }
 0x22d   : > { %v2256_v31 = vadd.f32 -0.6931472, %v962_v56  ;;  %v931_v50 = vand.u32 2147483647, %v3922_v32  ;;  %v958_v26 = vand.u32 2147483647, %v2839_v38  ;;  %v951_v47 = vsel %vm3955_vm12, %v948_v30, %v945_v24 }
 0x22e   : > { %v751_v39 = vmax.f32 %v3793_v21, 0.0  ;;  %v752_v36 = vmax.f32 %v3812_v9, 0.0  ;;  %v930_v12 = vmul.f32 %v3922_v32, %v929_v58  ;;  %v957_v59 = vmul.f32 %v2839_v38, %v956_v22  ;;  %v1276_v30 = vld [vmem:[#allocation2 + $0x58] sm:$0xff] }
 0x22f   : > { %v993_v41 = vpack.c.bf16 %v2256_v31, %v2255_v61  ;;  %v2849_v29 = vpop.eup %2848  ;;  %v938_v62 = vadd.f32 1.0, %v937_v57  ;;  %vm932_vm13 = vcmp.lt.f32.partialorder %v931_v50, 0.0004427343  ;;  %vm959_vm14 = vcmp.lt.f32.partialorder %v958_v26, 0.0004427343  ;;  %p2314_p11 = scmp.ne.s32.totalorder %s4508_s20, 4 }
 0x230   : > { %v2851_v34 = vpop.eup %2850  ;;  %v927_v45 = vmul.f32 0.6931472, %v2849_v29  ;;  %v975_v0 = vadd.f32 %v951_v47, %v751_v39  ;;  %v940_v2 = vand.u32 2147483647, %v2845_v14  ;;  %v749_v32 = vmax.f32 %v3799_v43, 0.0  ;;  %s4509_s29 = sld [smem:[#allocation32_spill]] (!%p2314_p11) }
 0x231   : > { %2484 = vmatprep.mubr.bf16.mxu1 %v993_v41  ;;  %v954_v18 = vmul.f32 0.6931472, %v2851_v34  ;;  %v750_v38 = vmax.f32 %v3858_v51, 0.0  ;;  %v939_v60 = vmul.f32 %v2845_v14, %v938_v62  ;;  %v1170_v51 = vlaneseq  ;;  %s4530_s3 = sld [smem:[#allocation33_spill]] (!%p2314_p11) }
 0x232   : > { %2485 = vmatmul.mubr.bf16.vlgmr.msra.gmra.mrb[0].mxu1 %v994_v23  ;;  %v933_v21 = vsel %vm932_vm13, %v930_v12, %v927_v45  ;;  %v2269_v19 = vadd.f32 -0.6931472, %v975_v0  ;;  %vm941_vm15 = vcmp.lt.f32.partialorder %v940_v2, 0.0004427343  ;;  %v1187_v14 = vstv %s2280_s14 }
 0x233   : > { %2488 = vmatprep.mubr.bf16.mxu1 %v995_v37  ;;  %v960_v9 = vsel %vm959_vm14, %v957_v59, %v954_v18  ;;  %v973_v63 = vadd.f32 %v933_v21, %v749_v32  ;;  %v1171_v37 = vshrl.u32 %v1170_v51, 7  ;;  %v2271_v59 = vld [vmem:[%s4507_s26] ss:$0 sm:$0xff] }
 0x234   : > { %v2853_v1 = vpop.eup %2852  ;;  %v976_v53 = vadd.f32 %v960_v9, %v752_v36 }
 0x235   : > { %v936_v49 = vmul.f32 0.6931472, %v2853_v1  ;;  %v2267_v42 = vadd.f32 -0.6931472, %v973_v63  ;;  %v1172_v3 = vadd.s32 8, %v1171_v37  ;;  %v1179_v33 = vadd.s32 64, %v1171_v37 }
 0x236   : > { %v2270_v23 = vadd.f32 -0.6931472, %v976_v53  ;;  %v1180_v13 = vadd.s32 72, %v1171_v37  ;;  %v1173_v27 = vadd.s32 16, %v1171_v37  ;;  %v1174_v6 = vadd.s32 24, %v1171_v37 }
 0x237   : > { %v942_v5 = vsel %vm941_vm15, %v939_v60, %v936_v49  ;;  %v1188_v7 = vadd.s32 %v1187_v14, %v1171_v37  ;;  %v1196_v4 = vadd.s32 %v1187_v14, %v1179_v33  ;;  %v1182_v17 = vadd.s32 88, %v1171_v37 }
 0x238   : > { %v974_v8 = vadd.f32 %v942_v5, %v750_v38  ;;  %v1000_v48 = vpack.c.bf16 %v2270_v23, %v2269_v19  ;;  %v1197_v28 = vadd.s32 %v1187_v14, %v1180_v13  ;;  %v1190_v40 = vadd.s32 %v1187_v14, %v1173_v27 }
 0x239   : > { %v1191_v35 = vadd.s32 %v1187_v14, %v1174_v6  ;;  %vm1209_vm0 = vcmp.eq.s32.totalorder %v1188_v7, %v2281_v16  ;;  %vm1217_vm2 = vcmp.eq.s32.totalorder %v1196_v4, %v2281_v16  ;;  %v1199_v52 = vadd.s32 %v1187_v14, %v1182_v17 }
 0x23a   : > { %2489 = vmatmul.mubr.bf16.gmra.mrb[4].mxu1 %v996_v11  ;;  %v2268_v43 = vadd.f32 -0.6931472, %v974_v8  ;;  %v1189_v11 = vadd.s32 %v1187_v14, %v1172_v3  ;;  %vm1218_vm3 = vcmp.eq.s32.totalorder %v1197_v28, %v2281_v16  ;;  %vm1211_vm5 = vcmp.eq.s32.totalorder %v1190_v40, %v2281_v16 }
 0x23b   : > { %2492 = vmatprep.mubr.bf16.mxu1 %v997_v54  ;;  %vm1212_vm6 = vcmp.eq.s32.totalorder %v1191_v35, %v2281_v16  ;;  %v3255_v54 = vmov 1.0|1.0   ;;  %vm2306_vm7 = vmpackc.low %vm1218_vm3, %vm1217_vm2  ;;  %v1175_v44 = vadd.s32 32, %v1171_v37  ;;  %v1176_v55 = vadd.s32 40, %v1171_v37 }
 0x23c   : > { %v999_v15 = vpack.c.bf16 %v2268_v43, %v2267_v42  ;;  %vm1210_vm1 = vcmp.eq.s32.totalorder %v1189_v11, %v2281_v16  ;;  %v1183_v46 = vadd.s32 96, %v1171_v37  ;;  %v1184_v56 = vadd.s32 104, %v1171_v37  ;;  %vm3981_vm8 = vmpackc.low %vm1212_vm6, %vm1211_vm5 }
 0x23d   : > { %vm2298_vm4 = vmpackc.low %vm1210_vm1, %vm1209_vm0  ;;  %vm1220_vm10 = vcmp.eq.s32.totalorder %v1199_v52, %v2281_v16  ;;  %v1177_v61 = vadd.s32 48, %v1171_v37  ;;  %v1178_v31 = vadd.s32 56, %v1171_v37  ;;  %v1192_v58 = vadd.s32 %v1187_v14, %v1175_v44  ;;  %v1267_v44 = vld [vmem:[#allocation2 + $0x10] sm:$0xff] }
 0x23e   : > { %2516 = vmatprep.mubr.msk.bf16.mxu0 %vm2298_vm4, %v3255_v54  ;;  %v1193_v22 = vadd.s32 %v1187_v14, %v1176_v55  ;;  %v1200_v57 = vadd.s32 %v1187_v14, %v1183_v46  ;;  %v1201_v25 = vadd.s32 %v1187_v14, %v1184_v56  ;;  %v1185_v41 = vadd.s32 112, %v1171_v37  ;;  %v1275_v55 = vld [vmem:[#allocation2 + $0x50] sm:$0xff]  ;;  %v1265_v46 = vld [vmem:[#allocation2] sm:$0xff] }
 0x23f   : > { %v1194_v50 = vadd.s32 %v1187_v14, %v1177_v61  ;;  %v1195_v26 = vadd.s32 %v1187_v14, %v1178_v31  ;;  %v1186_v29 = vadd.s32 120, %v1171_v37  ;;  %vm1213_vm12 = vcmp.eq.s32.totalorder %v1192_v58, %v2281_v16  ;;  %v1273_v56 = vld [vmem:[#allocation2 + $0x40] sm:$0xff]  ;;  %v1268_v31 = vld [vmem:[#allocation2 + $0x18] sm:$0xff] }
 0x240   : > { %vm1214_vm13 = vcmp.eq.s32.totalorder %v1193_v22, %v2281_v16  ;;  %vm1221_vm14 = vcmp.eq.s32.totalorder %v1200_v57, %v2281_v16  ;;  %vm1222_vm15 = vcmp.eq.s32.totalorder %v1201_v25, %v2281_v16  ;;  %v1202_v34 = vadd.s32 %v1187_v14, %v1185_v41 }
 0x241   : > { %vm3989_vm0 = vmpackc.low %vm1214_vm13, %vm1213_vm12  ;;  %vm1215_vm1 = vcmp.eq.s32.totalorder %v1194_v50, %v2281_v16  ;;  %vm1216_vm2 = vcmp.eq.s32.totalorder %v1195_v26, %v2281_v16  ;;  %v1203_v39 = vadd.s32 %v1187_v14, %v1186_v29  ;;  %v1266_v50 = vld [vmem:[#allocation2 + $0x8] sm:$0xff] }
 0x242   : > { %2493 = vmatmul.mubr.bf16.gmra.mrb[8].mxu1 %v998_v20  ;;  %v1181_v20 = vadd.s32 80, %v1171_v37  ;;  %vm3993_vm3 = vmpackc.low %vm1222_vm15, %vm1221_vm14  ;;  %vm1223_vm5 = vcmp.eq.s32.totalorder %v1202_v34, %v2281_v16  ;;  %v1274_v26 = vld [vmem:[#allocation2 + $0x48] sm:$0xff] }
 0x243   : > { %2496 = vmatprep.mubr.bf16.mxu1 %v999_v15  ;;  %vm3997_vm4 = vmpackc.low %vm1216_vm2, %vm1215_vm1  ;;  %vm1224_vm6 = vcmp.eq.s32.totalorder %v1203_v39, %v2281_v16 }
 0x244   : > { %v1198_v10 = vadd.s32 %v1187_v14, %v1181_v20 }
 0x246   : > { %vm1219_vm9 = vcmp.eq.s32.totalorder %v1198_v10, %v2281_v16 }
 0x247   : > { %vm3985_vm11 = vmpackc.low %vm1220_vm10, %vm1219_vm9 }
 0x24a   : > { %2497 = vmatmul.mubr.bf16.gmra.mrb[12].mxu1 %v1000_v48 }
 0x24b   : > { %2524 = vmatprep.mubr.msk.bf16.mxu1 %vm2306_vm7, %v3255_v54  ;;  %vm4001_vm7 = vmpackc.low %vm1224_vm6, %vm1223_vm5 }
 0x305   : > { %v2486_v18 = vpop.f32.mrb[0].mxu1 }
 0x306   : > { %v1106_v62 = vpop.f32.mrb[1].mxu1  ;;  %v1115_v2 = vadd.f32 %v2486_v18, %v2271_v59 }
 0x307   : > { %v2487_v0 = vpop.f32.mrb[2].mxu1  ;;  %v1107_v1 = vadd.f32 %v2271_v59, %v1106_v62  ;;  %v1279_v62 = vld [vmem:[#allocation2 + $0x70] sm:$0xff] }
 0x308   : > { %v1118_v21 = vadd.f32 %v2487_v0, %v2271_v59  ;;  %v1109_v9 = vpop.f32.mrb[3].mxu1  ;;  %v1269_v0 = vld [vmem:[#allocation2 + $0x20] sm:$0xff] }
 0x309   : > { %v1110_v32 = vadd.f32 %v2271_v59, %v1109_v9 }
 0x30a   : > { %v1282_v53 = vpack.c.bf16 %v1118_v21, %v1115_v2  ;;  %v1277_v2 = vld [vmem:[#allocation2 + $0x60] sm:$0xff] }
 0x30b   : > { %v1281_v38 = vpack.c.bf16 %v1110_v32, %v1107_v1  ;;  %v1272_v1 = vld [vmem:[#allocation2 + $0x38] sm:$0xff] }
 0x30c   : > { %v1280_v32 = vld [vmem:[#allocation2 + $0x78] sm:$0xff] }
 0x30d   : > { %v2490_v49 = vpop.f32.mrb[4].mxu1  ;;  %2500 = vmatprep.subr.bf16.mxu0 %v1281_v38  ;;  %2596 = vmatprep.subr.bf16.mxu1 %v1281_v38 }
 0x30e   : > { %v1122_v60 = vpop.f32.mrb[5].mxu1  ;;  %2501 = vmatpush3.bf16.msra.mxu0 %v1281_v38  ;;  %2604 = vmatpush3.bf16.msra.mxu1 %v1281_v38  ;;  %v1131_v63 = vadd.f32 %v2490_v49, %v2271_v59 }
 0x30f   : > { %v2491_v19 = vpop.f32.mrb[6].mxu1  ;;  %2502 = vmatprep.subr.bf16.mxu0 %v1282_v53  ;;  %2597 = vmatprep.subr.bf16.mxu1 %v1282_v53  ;;  %v1123_v8 = vadd.f32 %v2271_v59, %v1122_v60 }
 0x310   : > { %v1134_v23 = vadd.f32 %v2491_v19, %v2271_v59  ;;  %v1125_v5 = vpop.f32.mrb[7].mxu1  ;;  %v1270_v19 = vld [vmem:[#allocation2 + $0x28] sm:$0xff] }
 0x311   : > { %v1126_v48 = vadd.f32 %v2271_v59, %v1125_v5 }
 0x312   : > { %v1284_v42 = vpack.c.bf16 %v1134_v23, %v1131_v63  ;;  %2503 = vmatpush3.bf16.msra.mxu0 %v1282_v53  ;;  %2605 = vmatpush3.bf16.msra.mxu1 %v1282_v53  ;;  %v1278_v63 = vld [vmem:[#allocation2 + $0x68] sm:$0xff] }
 0x313   : > { %v1283_v43 = vpack.c.bf16 %v1126_v48, %v1123_v8 }
 0x315   : > { %v2494_v15 = vpop.f32.mrb[8].mxu1  ;;  %2504 = vmatprep.subr.bf16.mxu0 %v1283_v43  ;;  %2598 = vmatprep.subr.bf16.mxu1 %v1283_v43 }
 0x316   : > { %v1138_v51 = vpop.f32.mrb[9].mxu1  ;;  %2505 = vmatpush3.bf16.msra.mxu0 %v1283_v43  ;;  %2606 = vmatpush3.bf16.msra.mxu1 %v1283_v43  ;;  %v1147_v3 = vadd.f32 %v2494_v15, %v2271_v59 }
 0x317   : > { %v2495_v37 = vpop.f32.mrb[10].mxu1  ;;  %2506 = vmatprep.subr.bf16.mxu0 %v1284_v42  ;;  %2599 = vmatprep.subr.bf16.mxu1 %v1284_v42  ;;  %v1139_v14 = vadd.f32 %v2271_v59, %v1138_v51 }
 0x318   : > { %v1150_v33 = vadd.f32 %v2495_v37, %v2271_v59  ;;  %v1141_v13 = vpop.f32.mrb[11].mxu1 }
 0x319   : > { %v1142_v16 = vadd.f32 %v2271_v59, %v1141_v13  ;;  %v2855_v13 = vld [vmem:[#allocation11 + $0x8] sm:$0xff] (!%p2314_p11)  }
 0x31a   : > { %v1286_v27 = vpack.c.bf16 %v1150_v33, %v1147_v3  ;;  %2507 = vmatpush3.bf16.msra.mxu0 %v1284_v42  ;;  %2607 = vmatpush3.bf16.msra.mxu1 %v1284_v42  ;;  %v2854_v33 = vld [vmem:[#allocation11] sm:$0xff] (!%p2314_p11)  }
 0x31b   : > { %v1285_v6 = vpack.c.bf16 %v1142_v16, %v1139_v14  ;;  %v2856_v14 = vld [vmem:[#allocation11 + $0x10] sm:$0xff] (!%p2314_p11)   ;;  %v2857_v16 = vld [vmem:[#allocation11 + $0x18] sm:$0xff] (!%p2314_p11)  }
 0x31d   : > { %v2498_v7 = vpop.f32.mrb[12].mxu1  ;;  %2508 = vmatprep.subr.bf16.mxu0 %v1285_v6  ;;  %2600 = vmatprep.subr.bf16.mxu1 %v1285_v6 }
 0x31e   : > { %v1154_v11 = vpop.f32.mrb[13].mxu1  ;;  %2509 = vmatpush3.bf16.msra.mxu0 %v1285_v6  ;;  %2608 = vmatpush3.bf16.msra.mxu1 %v1285_v6  ;;  %v1163_v28 = vadd.f32 %v2498_v7, %v2271_v59 }
 0x31f   : > { %v2499_v4 = vpop.f32.mrb[14].mxu1  ;;  %2510 = vmatprep.subr.bf16.mxu0 %v1286_v27  ;;  %2601 = vmatprep.subr.bf16.mxu1 %v1286_v27  ;;  %v1155_v20 = vadd.f32 %v2271_v59, %v1154_v11  ;;  %v2858_v11 = vld [vmem:[#allocation11 + $0x20] sm:$0xff] (!%p2314_p11)  }
 0x320   : > { %v1166_v40 = vadd.f32 %v2499_v4, %v2271_v59  ;;  %v1157_v35 = vpop.f32.mrb[15].mxu1  ;;  %v2859_v4 = vld [vmem:[#allocation11 + $0x28] sm:$0xff] (!%p2314_p11)  }
 0x321   : > { %v1158_v17 = vadd.f32 %v2271_v59, %v1157_v35  ;;  %v1271_v59 = vld [vmem:[#allocation2 + $0x30] sm:$0xff] }
 0x322   : > { %v1288_v10 = vpack.c.bf16 %v1166_v40, %v1163_v28  ;;  %2511 = vmatpush3.bf16.msra.mxu0 %v1286_v27  ;;  %2609 = vmatpush3.bf16.msra.mxu1 %v1286_v27  ;;  %v2860_v28 = vld [vmem:[#allocation11 + $0x30] sm:$0xff] (!%p2314_p11)   ;;  %v2861_v40 = vld [vmem:[#allocation11 + $0x38] sm:$0xff] (!%p2314_p11)  }
 0x323   : > { %v1287_v52 = vpack.c.bf16 %v1158_v17, %v1155_v20 }
 0x325   : > { %2512 = vmatprep.subr.bf16.mxu0 %v1287_v52  ;;  %2602 = vmatprep.subr.bf16.mxu1 %v1287_v52 }
 0x326   : > { %2513 = vmatpush3.bf16.msra.mxu0 %v1287_v52  ;;  %2610 = vmatpush3.bf16.msra.mxu1 %v1287_v52 }
 0x327   : > { %2514 = vmatprep.subr.bf16.mxu0 %v1288_v10  ;;  %2603 = vmatprep.subr.bf16.mxu1 %v1288_v10 }
 0x32a   : > { %2515 = vmatpush3.bf16.msra.mxu0 %v1288_v10  ;;  %2611 = vmatpush3.bf16.msra.mxu1 %v1288_v10 }
 0x32b   : > { %2532 = vmatprep.subr.bf16.mxu0 (!%p2314_p11), %v2854_v33 }
 0x32d   : > { %2517 = vmatmul.mubr.msk.bf16.vlgmr.msra.gmra.mrb[16].mxu0 %vm3981_vm8, %v3255_v54  ;;  %2525 = vmatmul.mubr.msk.bf16.vlgmr.msra.gmra.mrb[16].mxu1 %vm3985_vm11, %v3255_v54 }
 0x32e   : > { %2520 = vmatprep.mubr.msk.bf16.mxu0 %vm3989_vm0, %v3255_v54  ;;  %2528 = vmatprep.mubr.msk.bf16.mxu1 %vm3993_vm3, %v3255_v54 }
 0x32f   : > { %2533 = vmatpush3.bf16.msra.mxu0 (!%p2314_p11), %v2854_v33 }
 0x330   : > { %2534 = vmatprep.subr.bf16.mxu0 (!%p2314_p11), %v2855_v13 }
 0x333   : > { %2535 = vmatpush3.bf16.msra.mxu0 (!%p2314_p11), %v2855_v13 }
 0x334   : > { %2536 = vmatprep.subr.bf16.mxu0 (!%p2314_p11), %v2856_v14 }
 0x335   : > { %2521 = vmatmul.mubr.msk.bf16.gmra.mrb[20].mxu0 %vm3997_vm4, %v3255_v54  ;;  %2529 = vmatmul.mubr.msk.bf16.gmra.mrb[20].mxu1 %vm4001_vm7, %v3255_v54 }
 0x337   : > { %2537 = vmatpush3.bf16.msra.mxu0 (!%p2314_p11), %v2856_v14 }
 0x338   : > { %2538 = vmatprep.subr.bf16.mxu0 (!%p2314_p11), %v2857_v16 }
 0x33b   : > { %2539 = vmatpush3.bf16.msra.mxu0 (!%p2314_p11), %v2857_v16 }
 0x33c   : > { %2540 = vmatprep.subr.bf16.mxu0 (!%p2314_p11), %v2858_v11 }
 0x33f   : > { %2541 = vmatpush3.bf16.msra.mxu0 (!%p2314_p11), %v2858_v11 }
 0x340   : > { %2542 = vmatprep.subr.bf16.mxu0 (!%p2314_p11), %v2859_v4 }
 0x343   : > { %2543 = vmatpush3.bf16.msra.mxu0 (!%p2314_p11), %v2859_v4 }
 0x344   : > { %2544 = vmatprep.subr.bf16.mxu0 (!%p2314_p11), %v2860_v28 }
 0x347   : > { %2545 = vmatpush3.bf16.msra.mxu0 (!%p2314_p11), %v2860_v28 }
 0x348   : > { %2546 = vmatprep.subr.bf16.mxu0 (!%p2314_p11), %v2861_v40 }
 0x34b   : > { %2547 = vmatpush3.bf16.msra.mxu0 (!%p2314_p11), %v2861_v40 }
 0x400   : > { %v2518_v24 = vpop.f32.mrb[16].mxu0  ;;  %v2526_v61 = vpop.f32.mrb[16].mxu1 }
 0x401   : > { %v1388_v58 = vadd.f32 %v2518_v24, %v1267_v44  ;;  %v1396_v22 = vadd.f32 %v2526_v61, %v1275_v55  ;;  %v1323_v57 = vpop.f32.mrb[17].mxu0  ;;  %v1355_v25 = vpop.f32.mrb[17].mxu1 }
 0x402   : > { %v1386_v41 = vadd.f32 %v1323_v57, %v1265_v46  ;;  %v1394_v29 = vadd.f32 %v1355_v25, %v1273_v56  ;;  %v2519_v47 = vpop.f32.mrb[18].mxu0  ;;  %v2527_v34 = vpop.f32.mrb[18].mxu1 }
 0x403   : > { %1404 = vst [vmem:[#allocation2 + $0x10] sm:$0xff] %v1388_v58  ;;  %1412 = vst [vmem:[#allocation2 + $0x50] sm:$0xff] %v1396_v22  ;;  %v1389_v54 = vadd.f32 %v2519_v47, %v1268_v31  ;;  %v1397_v39 = vadd.f32 %v2527_v34, %v1276_v30  ;;  %v1326_v45 = vpop.f32.mrb[19].mxu0  ;;  %v1358_v36 = vpop.f32.mrb[19].mxu1  ;;  %v2862_v47 = vld [vmem:[#allocation12] sm:$0xff] (!%p2314_p11)   ;;  %v2863_v34 = vld [vmem:[#allocation12 + $0x8] sm:$0xff] (!%p2314_p11)  }
 0x404   : > { %1402 = vst [vmem:[#allocation2] sm:$0xff] %v1386_v41  ;;  %1410 = vst [vmem:[#allocation2 + $0x40] sm:$0xff] %v1394_v29  ;;  %v1387_v12 = vadd.f32 %v1326_v45, %v1266_v50  ;;  %v1395_v18 = vadd.f32 %v1358_v36, %v1274_v26  ;;  %2564 = vmatprep.subr.bf16.mxu1 (!%p2314_p11), %v2862_v47  ;;  %v2866_v45 = vld [vmem:[#allocation12 + $0x20] sm:$0xff] (!%p2314_p11)   ;;  %v2867_v36 = vld [vmem:[#allocation12 + $0x28] sm:$0xff] (!%p2314_p11)  }
 0x405   : > { %1405 = vst [vmem:[#allocation2 + $0x18] sm:$0xff] %v1389_v54  ;;  %1413 = vst [vmem:[#allocation2 + $0x58] sm:$0xff] %v1397_v39  ;;  %2565 = vmatpush3.bf16.msra.mxu1 (!%p2314_p11), %v2862_v47  ;;  %v2864_v54 = vld [vmem:[#allocation12 + $0x10] sm:$0xff] (!%p2314_p11)   ;;  %v2865_v39 = vld [vmem:[#allocation12 + $0x18] sm:$0xff] (!%p2314_p11)  }
 0x406   : > { %1403 = vst [vmem:[#allocation2 + $0x8] sm:$0xff] %v1387_v12  ;;  %1411 = vst [vmem:[#allocation2 + $0x48] sm:$0xff] %v1395_v18  ;;  %2566 = vmatprep.subr.bf16.mxu1 (!%p2314_p11), %v2863_v34  ;;  %v2868_v12 = vld [vmem:[#allocation12 + $0x30] sm:$0xff] (!%p2314_p11)   ;;  %v2869_v18 = vld [vmem:[#allocation12 + $0x38] sm:$0xff] (!%p2314_p11)  }
 0x408   : > { %v2522_v21 = vpop.f32.mrb[20].mxu0  ;;  %v2530_v9 = vpop.f32.mrb[20].mxu1  ;;  %1421 = sbr.rel (%p2314_p11) target bundleno = 1569 (0x621), region = 92 }
 0x409   : > { %v1392_v53 = vadd.f32 %v2522_v21, %v1271_v59  ;;  %v1400_v38 = vadd.f32 %v2530_v9, %v1279_v62  ;;  %v1339_v49 = vpop.f32.mrb[21].mxu0  ;;  %v1371_v60 = vpop.f32.mrb[21].mxu1  ;;  %2567 = vmatpush3.bf16.msra.mxu1 (!%p2314_p11), %v2863_v34  ;;  %v4030_v59 = vld [vmem:[%s4509_s29] ss:$0 sm:$0xff] (!%p2314_p11) }
 0x40a   : > { %v1390_v23 = vadd.f32 %v1339_v49, %v1269_v0  ;;  %v1398_v5 = vadd.f32 %v1371_v60, %v1277_v2  ;;  %v2523_v8 = vpop.f32.mrb[22].mxu0  ;;  %v2531_v48 = vpop.f32.mrb[22].mxu1  ;;  %v1424_v35 = vld [vmem:[#allocation2 + $0x10] sm:$0xff] (!%p2314_p11)  ;;  %2568 = vmatprep.subr.bf16.mxu1 (!%p2314_p11), %v2864_v54 }
 0x40b   : > { %1408 = vst [vmem:[#allocation2 + $0x30] sm:$0xff] %v1392_v53  ;;  %1416 = vst [vmem:[#allocation2 + $0x70] sm:$0xff] %v1400_v38  ;;  %v1393_v42 = vadd.f32 %v2523_v8, %v1272_v1  ;;  %v1401_v43 = vadd.f32 %v2531_v48, %v1280_v32  ;;  %v1342_v15 = vpop.f32.mrb[23].mxu0  ;;  %v1374_v51 = vpop.f32.mrb[23].mxu1  ;;  %v1422_v27 = vld [vmem:[#allocation2] sm:$0xff] (!%p2314_p11)  ;;  %v1432_v30 = vld [vmem:[#allocation2 + $0x50] sm:$0xff] (!%p2314_p11) }
 0x40c   : > { %1406 = vst [vmem:[#allocation2 + $0x20] sm:$0xff] %v1390_v23  ;;  %1414 = vst [vmem:[#allocation2 + $0x60] sm:$0xff] %v1398_v5  ;;  %v1391_v37 = vadd.f32 %v1342_v15, %v1270_v19  ;;  %v1399_v3 = vadd.f32 %v1374_v51, %v1278_v63  ;;  %v1425_v20 = vld [vmem:[#allocation2 + $0x18] sm:$0xff] (!%p2314_p11)  ;;  %v1430_v56 = vld [vmem:[#allocation2 + $0x40] sm:$0xff] (!%p2314_p11) }
 0x40d   : > { %1409 = vst [vmem:[#allocation2 + $0x38] sm:$0xff] %v1393_v42  ;;  %1417 = vst [vmem:[#allocation2 + $0x78] sm:$0xff] %v1401_v43  ;;  %v1423_v6 = vld [vmem:[#allocation2 + $0x8] sm:$0xff] (!%p2314_p11)  ;;  %v1439_v52 = vpack.c.bf16 (!%p2314_p11), %v1425_v20, %v1424_v35  ;;  %v1433_v58 = vld [vmem:[#allocation2 + $0x58] sm:$0xff] (!%p2314_p11)  ;;  %2569 = vmatpush3.bf16.msra.mxu1 (!%p2314_p11), %v2864_v54 }
 0x40e   : > { %1407 = vst [vmem:[#allocation2 + $0x28] sm:$0xff] %v1391_v37  ;;  %1415 = vst [vmem:[#allocation2 + $0x68] sm:$0xff] %v1399_v3  ;;  %v1438_v7 = vpack.c.bf16 (!%p2314_p11), %v1423_v6, %v1422_v27  ;;  %v1431_v24 = vld [vmem:[#allocation2 + $0x48] sm:$0xff] (!%p2314_p11)  ;;  %v1443_v25 = vpack.c.bf16 (!%p2314_p11), %v1433_v58, %v1432_v30  ;;  %2570 = vmatprep.subr.bf16.mxu1 (!%p2314_p11), %v2865_v39 }
 0x40f   : > { %v1442_v31 = vpack.c.bf16 %v1431_v24, %v1430_v56 }
 0x410   : > { %2548 = vmatprep.mubr.bf16.mxu0 %v1438_v7 }
 0x411   : > { %2549 = vmatmul.mubr.bf16.vlgmr.msra.gmra.mrb[0].mxu0 %v1439_v52  ;;  %2571 = vmatpush3.bf16.msra.mxu1 %v2865_v39 }
 0x412   : > { %v1428_v55 = vld [vmem:[#allocation2 + $0x30] sm:$0xff]  ;;  %2572 = vmatprep.subr.bf16.mxu1 %v2866_v45 }
 0x413   : > { %v1426_v17 = vld [vmem:[#allocation2 + $0x20] sm:$0xff]  ;;  %v1436_v26 = vld [vmem:[#allocation2 + $0x70] sm:$0xff] }
 0x414   : > { %v1429_v46 = vld [vmem:[#allocation2 + $0x38] sm:$0xff]  ;;  %v1434_v22 = vld [vmem:[#allocation2 + $0x60] sm:$0xff] }
 0x415   : > { %v1427_v10 = vld [vmem:[#allocation2 + $0x28] sm:$0xff]  ;;  %v1441_v61 = vpack.c.bf16 %v1429_v46, %v1428_v55  ;;  %v1437_v41 = vld [vmem:[#allocation2 + $0x78] sm:$0xff]  ;;  %2573 = vmatpush3.bf16.msra.mxu1 %v2866_v45 }
 0x416   : > { %v1440_v44 = vpack.c.bf16 %v1427_v10, %v1426_v17  ;;  %v1435_v57 = vld [vmem:[#allocation2 + $0x68] sm:$0xff]  ;;  %v1445_v29 = vpack.c.bf16 %v1437_v41, %v1436_v26  ;;  %2574 = vmatprep.subr.bf16.mxu1 %v2867_v36 }
 0x417   : > { %v1444_v50 = vpack.c.bf16 %v1435_v57, %v1434_v22 }
 0x418   : > { %2552 = vmatprep.mubr.bf16.mxu0 %v1440_v44 }
 0x419   : > { %2553 = vmatmul.mubr.bf16.gmra.mrb[4].mxu0 %v1441_v61  ;;  %2575 = vmatpush3.bf16.msra.mxu1 %v2867_v36 }
 0x41a   : > { %2556 = vmatprep.mubr.bf16.mxu0 %v1442_v31  ;;  %2576 = vmatprep.subr.bf16.mxu1 %v2868_v12 }
 0x41d   : > { %2577 = vmatpush3.bf16.msra.mxu1 %v2868_v12 }
 0x41e   : > { %2578 = vmatprep.subr.bf16.mxu1 %v2869_v18 }
 0x421   : > { %2557 = vmatmul.mubr.bf16.gmra.mrb[8].mxu0 %v1443_v25  ;;  %2579 = vmatpush3.bf16.msra.mxu1 %v2869_v18 }
 0x422   : > { %2560 = vmatprep.mubr.bf16.mxu0 %v1444_v50 }
 0x429   : > { %2561 = vmatmul.mubr.bf16.gmra.mrb[12].mxu0 %v1445_v29 }
 0x4e4   : > { %v2550_v62 = vpop.f32.mrb[0].mxu0 }
 0x4e5   : > { %v4033_v0 = vadd.f32 %v2550_v62, %v4030_v59  ;;  %v1551_v2 = vpop.f32.mrb[1].mxu0 }
 0x4e6   : > { %v2551_v21 = vpop.f32.mrb[2].mxu0  ;;  %v4044_v8 = vadd.f32 %v4030_v59, %v1551_v2 }
 0x4e7   : > { %v1632_v9 = vand.u32 2147483647, %v4033_v0  ;;  %v4037_v1 = vadd.f32 %v2551_v21, %v4030_v59  ;;  %v1554_v32 = vpop.f32.mrb[3].mxu0  ;;  %v1616_v12 = vmax.f32 %v4033_v0, 0.0 }
 0x4e8   : > { %v4054_v37 = vadd.f32 %v4030_v59, %v1554_v32  ;;  %v1630_v16 = vand.u32 2147483647, %v4044_v8  ;;  %v1614_v21 = vmax.f32 %v4044_v8, 0.0 }
 0x4e9   : > { %v1648_v53 = vsub.f32 0.0, %v1632_v9  ;;  %v1633_v38 = vand.u32 2147483647, %v4037_v1  ;;  %v1617_v9 = vmax.f32 %v4037_v1, 0.0 }
 0x4ea   : > { %v1631_v4 = vand.u32 2147483647, %v4054_v37  ;;  %v1646_v52 = vsub.f32 0.0, %v1630_v16 }
 0x4eb   : > { %v1666_v49 = vmul.f32 1.442695, %v1648_v53  ;;  %v1649_v60 = vsub.f32 0.0, %v1633_v38  ;;  %v1615_v38 = vmax.f32 %v4054_v37, 0.0 }
 0x4ec   : > { %v2554_v19 = vpop.f32.mrb[4].mxu0  ;;  %v1647_v30 = vsub.f32 0.0, %v1631_v4  ;;  %v1662_v50 = vmul.f32 1.442695, %v1646_v52 }
 0x4ed   : > { %2870 = vpow2.f32 %v1666_v49  ;;  %v1668_v63 = vmul.f32 1.442695, %v1649_v60  ;;  %v4041_v23 = vadd.f32 %v2554_v19, %v4030_v59  ;;  %v1567_v5 = vpop.f32.mrb[5].mxu0 }
 0x4ee   : > { %v4047_v48 = vadd.f32 %v4030_v59, %v1567_v5  ;;  %v2555_v42 = vpop.f32.mrb[6].mxu0  ;;  %v1664_v47 = vmul.f32 1.442695, %v1647_v30 }
 0x4ef   : > { %2872 = vpow2.f32 %v1668_v63  ;;  %v1636_v43 = vand.u32 2147483647, %v4041_v23  ;;  %v4051_v15 = vadd.f32 %v2555_v42, %v4030_v59  ;;  %v1570_v51 = vpop.f32.mrb[7].mxu0  ;;  %v1620_v63 = vmax.f32 %v4041_v23, 0.0 }
 0x4f0   : > { %v1634_v3 = vand.u32 2147483647, %v4047_v48  ;;  %v4058_v33 = vadd.f32 %v4030_v59, %v1570_v51 }
 0x4f1   : > { %v1652_v13 = vsub.f32 0.0, %v1636_v43  ;;  %v1637_v14 = vand.u32 2147483647, %v4051_v15 }
 0x4f2   : > { %v1650_v27 = vsub.f32 0.0, %v1634_v3  ;;  %v1635_v6 = vand.u32 2147483647, %v4058_v33  ;;  %v1618_v3 = vmax.f32 %v4047_v48, 0.0 }
 0x4f3   : > { %v1674_v7 = vmul.f32 1.442695, %v1652_v13  ;;  %v1653_v11 = vsub.f32 0.0, %v1637_v14 }
 0x4f4   : > { %v1670_v28 = vmul.f32 1.442695, %v1650_v27  ;;  %v1651_v40 = vsub.f32 0.0, %v1635_v6  ;;  %v2558_v35 = vpop.f32.mrb[8].mxu0 }
 0x4f5   : > { %2874 = vpow2.f32 %v1674_v7  ;;  %v1676_v20 = vmul.f32 1.442695, %v1653_v11  ;;  %v4065_v17 = vadd.f32 %v2558_v35, %v4030_v59  ;;  %v1583_v10 = vpop.f32.mrb[9].mxu0  ;;  %v1619_v35 = vmax.f32 %v4058_v33, 0.0 }
 0x4f6   : > { %2876 = vpow2.f32 %v1670_v28  ;;  %v1672_v44 = vmul.f32 1.442695, %v1651_v40  ;;  %v4068_v55 = vadd.f32 %v4030_v59, %v1583_v10  ;;  %v2559_v46 = vpop.f32.mrb[10].mxu0  ;;  %v1621_v40 = vmax.f32 %v4051_v15, 0.0 }
 0x4f7   : > { %v4070_v56 = vpop.eup %2870  ;;  %2878 = vpow2.f32 %v1676_v20  ;;  %v1640_v24 = vand.u32 2147483647, %v4065_v17  ;;  %v1586_v61 = vpop.f32.mrb[11].mxu0  ;;  %v4078_v25 = vadd.f32 %v2559_v46, %v4030_v59  ;;  %v1624_v52 = vmax.f32 %v4065_v17, 0.0 }
 0x4f8   : > { %v1712_v31 = vadd.f32 1.0, %v4070_v56  ;;  %2880 = vpow2.f32 %v1672_v44  ;;  %v1638_v57 = vand.u32 2147483647, %v4068_v55  ;;  %v4082_v34 = vadd.f32 %v4030_v59, %v1586_v61 }
 0x4f9   : > { %v4074_v58 = vpop.eup %2872  ;;  %v1656_v22 = vsub.f32 0.0, %v1640_v24  ;;  %v1641_v45 = vand.u32 2147483647, %v4078_v25  ;;  %v1715_v2 = vmul.f32 -0.5, %v4070_v56  ;;  %v1718_v16 = vand.u32 2147483647, %v4070_v56 }
 0x4fa   : > { %2882 = vlog2.f32 %v1712_v31  ;;  %v1654_v41 = vsub.f32 0.0, %v1638_v57  ;;  %v1721_v29 = vadd.f32 1.0, %v4074_v58  ;;  %v1639_v60 = vand.u32 2147483647, %v4082_v34 }
 0x4fb   : > { %v1682_v26 = vmul.f32 1.442695, %v1656_v22  ;;  %v1657_v42 = vsub.f32 0.0, %v1641_v45  ;;  %v1724_v51 = vmul.f32 -0.5, %v4074_v58  ;;  %v1716_v14 = vadd.f32 1.0, %v1715_v2 }
 0x4fc   : > { %v2562_v54 = vpop.f32.mrb[12].mxu0  ;;  %v1678_v39 = vmul.f32 1.442695, %v1654_v41  ;;  %v1727_v27 = vand.u32 2147483647, %v4074_v58  ;;  %v1655_v4 = vsub.f32 0.0, %v1639_v60 }
 0x4fd   : > { %2884 = vpow2.f32 %v1682_v26  ;;  %v1599_v36 = vpop.f32.mrb[13].mxu0  ;;  %v1684_v20 = vmul.f32 1.442695, %v1657_v42  ;;  %v1725_v10 = vadd.f32 1.0, %v1724_v51  ;;  %v1622_v44 = vmax.f32 %v4068_v55, 0.0 }
 0x4fe   : > { %2886 = vpow2.f32 %v1662_v50  ;;  %v4086_v18 = vpop.f32.mrb[14].mxu0  ;;  %v1717_v61 = vmul.f32 %v4070_v56, %v1716_v14  ;;  %vm4121_vm8 = vcmp.lt.f32.partialorder %v1718_v16, 0.0004427343  ;;  %vm4128_vm9 = vcmp.lt.f32.partialorder %v1727_v27, 0.0004427343 }
 0x4ff   : > { %v4088_v62 = vpop.eup %2874  ;;  %2888 = vpow2.f32 %v1678_v39  ;;  %v4093_v32 = vpop.f32.mrb[15].mxu0  ;;  %v4138_v45 = vadd.f32 %v2562_v54, %v4030_v59  ;;  %v4144_v42 = vadd.f32 %v4030_v59, %v1599_v36 }
 0x500   : > { %v4095_v53 = vpop.eup %2876  ;;  %2890 = vlog2.f32 %v1721_v29  ;;  %v1748_v49 = vadd.f32 1.0, %v4088_v62  ;;  %v1751_v7 = vmul.f32 -0.5, %v4088_v62  ;;  %v1754_v30 = vand.u32 2147483647, %v4088_v62 }
 0x501   : > { %v4100_v19 = vpop.eup %2878  ;;  %2892 = vpow2.f32 %v1664_v47  ;;  %v1730_v5 = vadd.f32 1.0, %v4095_v53  ;;  %v1733_v28 = vmul.f32 -0.5, %v4095_v53  ;;  %v1736_v26 = vand.u32 2147483647, %v4095_v53 }
 0x502   : > { %v4104_v43 = vpop.eup %2880  ;;  %2894 = vlog2.f32 %v1748_v49  ;;  %v1757_v13 = vadd.f32 1.0, %v4100_v19  ;;  %v1752_v50 = vadd.f32 1.0, %v1751_v7  ;;  %v1760_v41 = vmul.f32 -0.5, %v4100_v19 }
 0x503   : > { %2896 = vlog2.f32 %v1730_v5  ;;  %v1739_v11 = vadd.f32 1.0, %v4104_v43  ;;  %v1680_v29 = vmul.f32 1.442695, %v1655_v4  ;;  %v1734_v56 = vadd.f32 1.0, %v1733_v28 }
 0x504   : > { %v2883_v6 = vpop.eup %2882  ;;  %2898 = vlog2.f32 %v1757_v13  ;;  %v1763_v39 = vand.u32 2147483647, %v4100_v19  ;;  %v1726_v49 = vmul.f32 %v4074_v58, %v1725_v10  ;;  %v1742_v60 = vmul.f32 -0.5, %v4104_v43 }
 0x505   : > { %2900 = vlog2.f32 %v1739_v11  ;;  %v1714_v24 = vmul.f32 0.6931472, %v2883_v6  ;;  %vm4150_vm10 = vcmp.lt.f32.partialorder %v1754_v30, 0.0004427343  ;;  %v4157_v58 = vadd.f32 %v4086_v18, %v4030_v59 }
 0x506   : > { %2902 = vpow2.f32 %v1684_v20  ;;  %v1753_v27 = vmul.f32 %v4088_v62, %v1752_v50  ;;  %vm4160_vm11 = vcmp.lt.f32.partialorder %v1736_v26, 0.0004427343  ;;  %v1761_v6 = vadd.f32 1.0, %v1760_v41 }
 0x507   : > { %v4118_v46 = vpop.eup %2884  ;;  %v1720_v13 = vsel %vm4121_vm8, %v1717_v61, %v1714_v24  ;;  %2904 = vpow2.f32 %v1680_v29  ;;  %v1735_v4 = vmul.f32 %v4095_v53, %v1734_v56  ;;  %vm4165_vm12 = vcmp.lt.f32.partialorder %v1763_v39, 0.0004427343 }
 0x508   : > { %v4126_v22 = vpop.eup %2886  ;;  %v1784_v5 = vadd.f32 1.0, %v4118_v46  ;;  %v1745_v18 = vand.u32 2147483647, %v4104_v43  ;;  %v1840_v62 = vadd.f32 %v1720_v13, %v1616_v12  ;;  %v1743_v10 = vadd.f32 1.0, %v1742_v60 }
 0x509   : > { %v4134_v47 = vpop.eup %2888  ;;  %v1644_v24 = vand.u32 2147483647, %v4138_v45  ;;  %v1642_v30 = vand.u32 2147483647, %v4144_v42  ;;  %v1762_v50 = vmul.f32 %v4100_v19, %v1761_v6  ;;  %v1787_v26 = vmul.f32 -0.5, %v4118_v46 }
 0x50a   : > { %v2891_v2 = vpop.eup %2890  ;;  %v1766_v54 = vadd.f32 1.0, %v4134_v47  ;;  %2906 = vlog2.f32 %v1784_v5  ;;  %v1645_v29 = vand.u32 2147483647, %v4157_v58  ;;  %vm4179_vm13 = vcmp.lt.f32.partialorder %v1745_v18, 0.0004427343 }
 0x50b   : > { %v4146_v51 = vpop.eup %2892  ;;  %v1723_v11 = vmul.f32 0.6931472, %v2891_v2  ;;  %v1660_v41 = vsub.f32 0.0, %v1644_v24  ;;  %v1744_v2 = vmul.f32 %v4104_v43, %v1743_v10  ;;  %v1790_v60 = vand.u32 2147483647, %v4118_v46 }
 0x50c   : > { %v2895_v16 = vpop.eup %2894  ;;  %2908 = vlog2.f32 %v1766_v54  ;;  %v1658_v19 = vsub.f32 0.0, %v1642_v30  ;;  %v4187_v54 = vadd.f32 -0.6931472, %v1840_v62  ;;  %v4203_v14 = vadd.f32 %v4030_v59, %v4093_v32 }
 0x50d   : > { %v2897_v7 = vpop.eup %2896  ;;  %v1750_v61 = vmul.f32 0.6931472, %v2895_v16  ;;  %v1729_v0 = vsel %vm4128_vm9, %v1726_v49, %v1723_v11  ;;  %v1690_v5 = vmul.f32 1.442695, %v1660_v41  ;;  %v1661_v16 = vsub.f32 0.0, %v1645_v29 }
 0x50e   : > { %v2899_v20 = vpop.eup %2898  ;;  %v1732_v12 = vmul.f32 0.6931472, %v2897_v7  ;;  %v1841_v6 = vadd.f32 %v1729_v0, %v1617_v9  ;;  %v1788_v7 = vadd.f32 1.0, %v1787_v26  ;;  %v1686_v28 = vmul.f32 1.442695, %v1658_v19 }
 0x50f   : > { %v1759_v31 = vmul.f32 0.6931472, %v2899_v20  ;;  %v2901_v53 = vpop.eup %2900  ;;  %v1756_v57 = vsel %vm4150_vm10, %v1753_v27, %v1750_v61  ;;  %v1769_v20 = vmul.f32 -0.5, %v4134_v47  ;;  %2910 = vpow2.f32 %v1690_v5 }
 0x510   : > { %v1741_v56 = vmul.f32 0.6931472, %v2901_v53  ;;  %v4185_v13 = vpop.eup %2902  ;;  %v1738_v18 = vsel %vm4160_vm11, %v1735_v4, %v1732_v12  ;;  %v1844_v1 = vadd.f32 %v1756_v57, %v1620_v63  ;;  %vm4213_vm14 = vcmp.lt.f32.partialorder %v1790_v60, 0.0004427343 }
 0x511   : > { %v1765_v49 = vsel %vm4165_vm12, %v1762_v50, %v1759_v31  ;;  %v1793_v11 = vadd.f32 1.0, %v4185_v13  ;;  %v4205_v27 = vpop.eup %2904  ;;  %v1692_v32 = vmul.f32 1.442695, %v1661_v16  ;;  %v4218_v10 = vadd.f32 -0.6931472, %v1841_v6 }
 0x512   : > { %v1747_v43 = vsel %vm4179_vm13, %v1744_v2, %v1741_v56  ;;  %v1845_v9 = vadd.f32 %v1765_v49, %v1621_v40  ;;  %v1775_v59 = vadd.f32 1.0, %v4205_v27  ;;  %v1842_v23 = vadd.f32 %v1738_v18, %v1618_v3 }
 0x513   : > { %2912 = vlog2.f32 %v1793_v11  ;;  %v1843_v36 = vadd.f32 %v1747_v43, %v1619_v35  ;;  %v1789_v15 = vmul.f32 %v4118_v46, %v1788_v7  ;;  %v1772_v63 = vand.u32 2147483647, %v4134_v47 }
 0x514   : > { %v2907_v62 = vpop.eup %2906  ;;  %v1796_v33 = vmul.f32 -0.5, %v4185_v13  ;;  %2914 = vlog2.f32 %v1775_v59  ;;  %v1643_v35 = vand.u32 2147483647, %v4203_v14  ;;  %v1694_v24 = vadd.f32 1.0, %v4126_v22 }
 0x515   : > { %v4227_v61 = vadd.f32 -0.6931472, %v1844_v1  ;;  %v4229_v31 = vadd.f32 -0.6931472, %v1845_v9  ;;  %v1770_v30 = vadd.f32 1.0, %v1769_v20  ;;  %2916 = vpow2.f32 %v1686_v28 }
 0x516   : > { %v2909_v40 = vpop.eup %2908  ;;  %v4231_v48 = vadd.f32 -0.6931472, %v1843_v36  ;;  %v1778_v3 = vmul.f32 -0.5, %v4205_v27  ;;  %2918 = vpow2.f32 %v1692_v32  ;;  %v1659_v46 = vsub.f32 0.0, %v1643_v35 }
 0x517   : > { %v1786_v53 = vmul.f32 0.6931472, %v2907_v62  ;;  %v1768_v50 = vmul.f32 0.6931472, %v2909_v40  ;;  %2920 = vlog2.f32 %v1694_v24  ;;  %v1703_v26 = vadd.f32 1.0, %v4146_v51 }
 0x518   : > { %v4235_v41 = vadd.f32 -0.6931472, %v1842_v23  ;;  %v1797_v29 = vadd.f32 1.0, %v1796_v33  ;;  %v1688_v0 = vmul.f32 1.442695, %v1659_v46  ;;  %v1871_v12 = vpack.c.bf16 %v4218_v10, %v4187_v54 }
 0x519   : > { %v1771_v56 = vmul.f32 %v4134_v47, %v1770_v30  ;;  %vm4240_vm15 = vcmp.lt.f32.partialorder %v1772_v63, 0.0004427343  ;;  %v1799_v2 = vand.u32 2147483647, %v4185_v13  ;;  %2922 = vlog2.f32 %v1703_v26  ;;  %v4245_v60 = vpop.eup %2910 }
 0x51a   : > { %v1779_v5 = vadd.f32 1.0, %v1778_v3  ;;  %2924 = vpow2.f32 %v1688_v0  ;;  %v1872_v19 = vpack.c.bf16 %v4231_v48, %v4235_v41  ;;  %v1873_v57 = vpack.c.bf16 %v4229_v31, %v4227_v61  ;;  %v2340_v41 = vld [vmem:[%s4530_s3] ss:$0 sm:$0xff] }
 0x51b   : > { %v1792_v47 = vsel %vm4213_vm14, %v1789_v15, %v1786_v53  ;;  %v1774_v16 = vsel %vm4240_vm15, %v1771_v56, %v1768_v50  ;;  %v1820_v6 = vadd.f32 1.0, %v4245_v60  ;;  %v1697_v43 = vmul.f32 -0.5, %v4126_v22 }
 0x51c   : > { %v1798_v11 = vmul.f32 %v4185_v13, %v1797_v29  ;;  %v1781_v18 = vand.u32 2147483647, %v4205_v27  ;;  %v1706_v20 = vmul.f32 -0.5, %v4146_v51  ;;  %v1625_v1 = vmax.f32 %v4078_v25, 0.0 }
 0x51d   : > { %v2913_v49 = vpop.eup %2912  ;;  %vm1800_vm0 = vcmp.lt.f32.partialorder %v1799_v2, 0.0004427343  ;;  %v1623_v9 = vmax.f32 %v4082_v34, 0.0  ;;  %2926 = vlog2.f32 %v1820_v6  ;;  %v1848_v36 = vadd.f32 %v1792_v47, %v1624_v52 }
 0x51e   : > { %v1795_v7 = vmul.f32 0.6931472, %v2913_v49  ;;  %v2915_v28 = vpop.eup %2914  ;;  %v1846_v4 = vadd.f32 %v1774_v16, %v1622_v44  ;;  %v1780_v13 = vmul.f32 %v4205_v27, %v1779_v5  ;;  %v1698_v15 = vadd.f32 1.0, %v1697_v43 }
 0x51f   : > { %v4267_v32 = vpop.eup %2916  ;;  %v1777_v23 = vmul.f32 0.6931472, %v2915_v28  ;;  %v1700_v25 = vand.u32 2147483647, %v4126_v22  ;;  %vm1782_vm1 = vcmp.lt.f32.partialorder %v1781_v18, 0.0004427343 }
 0x520   : > { %v1801_v59 = vsel %vm1800_vm0, %v1798_v11, %v1795_v7  ;;  %v2919_v63 = vpop.eup %2918  ;;  %v1802_v34 = vadd.f32 1.0, %v4267_v32  ;;  %v1707_v40 = vadd.f32 1.0, %v1706_v20  ;;  %v1709_v17 = vand.u32 2147483647, %v4146_v51 }
 0x521   : > { %v1849_v62 = vadd.f32 %v1801_v59, %v1625_v1  ;;  %v2921_v52 = vpop.eup %2920  ;;  %v1783_v44 = vsel %vm1782_vm1, %v1780_v13, %v1777_v23  ;;  %v1823_v27 = vmul.f32 -0.5, %v4245_v60  ;;  %v1829_v33 = vadd.f32 1.0, %v2919_v63 }
 0x522   : > { %v4275_v35 = vadd.f32 -0.6931472, %v1848_v36  ;;  %v4277_v24 = vadd.f32 -0.6931472, %v1846_v4  ;;  %v1847_v30 = vadd.f32 %v1783_v44, %v1623_v9  ;;  %2928 = vlog2.f32 %v1802_v34 }
 0x523   : > { %v4272_v55 = vadd.f32 -0.6931472, %v1849_v62  ;;  %v2923_v3 = vpop.eup %2922  ;;  %2930 = vlog2.f32 %v1829_v33  ;;  %v1696_v46 = vmul.f32 0.6931472, %v2921_v52  ;;  %v1699_v53 = vmul.f32 %v4126_v22, %v1698_v15 }
 0x524   : > { %vm4280_vm2 = vcmp.lt.f32.partialorder %v1700_v25, 0.0004427343  ;;  %v2925_v26 = vpop.eup %2924  ;;  %v4284_v29 = vadd.f32 -0.6931472, %v1847_v30  ;;  %v1705_v0 = vmul.f32 0.6931472, %v2923_v3  ;;  %v1708_v56 = vmul.f32 %v4146_v51, %v1707_v40 }
 0x525   : > { %v1875_v39 = vpack.c.bf16 %v4272_v55, %v4275_v35  ;;  %v1824_v2 = vadd.f32 1.0, %v1823_v27  ;;  %v1805_v5 = vmul.f32 -0.5, %v4267_v32  ;;  %v1811_v49 = vadd.f32 1.0, %v2925_v26 }
 0x526   : > { %vm1710_vm3 = vcmp.lt.f32.partialorder %v1709_v17, 0.0004427343  ;;  %v1832_v47 = vmul.f32 -0.5, %v2919_v63  ;;  %v1702_v22 = vsel %vm4280_vm2, %v1699_v53, %v1696_v46  ;;  %v1874_v6 = vpack.c.bf16 %v4284_v29, %v4277_v24 }
 0x527   : > { %v1711_v16 = vsel %vm1710_vm3, %v1708_v56, %v1705_v0  ;;  %v2927_v43 = vpop.eup %2926  ;;  %v1826_v7 = vand.u32 2147483647, %v4245_v60  ;;  %2932 = vlog2.f32 %v1811_v49  ;;  %v1838_v51 = vadd.f32 %v1702_v22, %v1614_v21 }
 0x528   : > { %v1839_v11 = vadd.f32 %v1711_v16, %v1615_v38  ;;  %v1822_v18 = vmul.f32 0.6931472, %v2927_v43  ;;  %v1825_v9 = vmul.f32 %v4245_v60, %v1824_v2  ;;  %v1806_v28 = vadd.f32 1.0, %v1805_v5 }
 0x529   : > { %v2324_v20 = vadd.f32 -0.6931472, %v1838_v51  ;;  %v1833_v36 = vadd.f32 1.0, %v1832_v47  ;;  %v1814_v4 = vmul.f32 -0.5, %v2925_v26  ;;  %vm4300_vm4 = vcmp.lt.f32.partialorder %v1826_v7, 0.0004427343 }
 0x52a   : > { %v2325_v1 = vadd.f32 -0.6931472, %v1839_v11  ;;  %v1808_v13 = vand.u32 2147483647, %v4267_v32  ;;  %v1835_v62 = vand.u32 2147483647, %v2919_v63  ;;  %v1828_v37 = vsel %vm4300_vm4, %v1825_v9, %v1822_v18 }
 0x52b   : > { %v1628_v23 = vmax.f32 %v4138_v45, 0.0  ;;  %v1629_v60 = vmax.f32 %v4157_v58, 0.0  ;;  %v1807_v25 = vmul.f32 %v4267_v32, %v1806_v28  ;;  %v1834_v40 = vmul.f32 %v2919_v63, %v1833_v36 }
 0x52c   : > { %v1870_v8 = vpack.c.bf16 %v2325_v1, %v2324_v20  ;;  %v2929_v21 = vpop.eup %2928  ;;  %v1815_v17 = vadd.f32 1.0, %v1814_v4  ;;  %vm1809_vm5 = vcmp.lt.f32.partialorder %v1808_v13, 0.0004427343  ;;  %vm1836_vm6 = vcmp.lt.f32.partialorder %v1835_v62, 0.0004427343 }
 0x52d   : > { %v2931_v38 = vpop.eup %2930  ;;  %v1804_v15 = vmul.f32 0.6931472, %v2929_v21  ;;  %v1852_v52 = vadd.f32 %v1828_v37, %v1628_v23  ;;  %v1817_v55 = vand.u32 2147483647, %v2925_v26  ;;  %v1626_v32 = vmax.f32 %v4144_v42, 0.0 }
 0x52e   : > { %2580 = vmatprep.mubr.bf16.mxu1 %v1870_v8  ;;  %v1831_v34 = vmul.f32 0.6931472, %v2931_v38  ;;  %v1627_v63 = vmax.f32 %v4203_v14, 0.0  ;;  %v1816_v35 = vmul.f32 %v2925_v26, %v1815_v17 }
 0x52f   : > { %2581 = vmatmul.mubr.bf16.vlgmr.msra.gmra.mrb[0].mxu1 %v1871_v12  ;;  %v1810_v45 = vsel %vm1809_vm5, %v1807_v25, %v1804_v15  ;;  %v2338_v54 = vadd.f32 -0.6931472, %v1852_v52  ;;  %vm1818_vm7 = vcmp.lt.f32.partialorder %v1817_v55, 0.0004427343 }
 0x530   : > { %2584 = vmatprep.mubr.bf16.mxu1 %v1872_v19  ;;  %v1837_v58 = vsel %vm1836_vm6, %v1834_v40, %v1831_v34  ;;  %v1850_v10 = vadd.f32 %v1810_v45, %v1626_v32 }
 0x531   : > { %v2933_v44 = vpop.eup %2932  ;;  %v1853_v27 = vadd.f32 %v1837_v58, %v1629_v60 }
 0x532   : > { %v1813_v33 = vmul.f32 0.6931472, %v2933_v44  ;;  %v2336_v48 = vadd.f32 -0.6931472, %v1850_v10 }
 0x533   : > { %v2339_v12 = vadd.f32 -0.6931472, %v1853_v27 }
 0x534   : > { %v1819_v24 = vsel %vm1818_vm7, %v1816_v35, %v1813_v33 }
 0x535   : > { %v1851_v30 = vadd.f32 %v1819_v24, %v1627_v63  ;;  %v1877_v3 = vpack.c.bf16 %v2339_v12, %v2338_v54 }
 0x537   : > { %2585 = vmatmul.mubr.bf16.gmra.mrb[4].mxu1 %v1873_v57  ;;  %v2337_v42 = vadd.f32 -0.6931472, %v1851_v30 }
 0x538   : > { %2588 = vmatprep.mubr.bf16.mxu1 %v1874_v6 }
 0x539   : > { %v1876_v14 = vpack.c.bf16 %v2337_v42, %v2336_v48 }
 0x53f   : > { %2589 = vmatmul.mubr.bf16.gmra.mrb[8].mxu1 %v1875_v39 }
 0x540   : > { %2592 = vmatprep.mubr.bf16.mxu1 %v1876_v14 }
 0x547   : > { %2593 = vmatmul.mubr.bf16.gmra.mrb[12].mxu1 %v1877_v3 }
 0x602   : > { %v2582_v19 = vpop.f32.mrb[0].mxu1 }
 0x603   : > { %v1992_v46 = vadd.f32 %v2582_v19, %v2340_v41  ;;  %v1983_v53 = vpop.f32.mrb[1].mxu1 }
 0x604   : > { %v1984_v61 = vadd.f32 %v2340_v41, %v1983_v53  ;;  %v2583_v31 = vpop.f32.mrb[2].mxu1 }
 0x605   : > { %2048 = vst [vmem:[%s3671_s7 + $0x10] sm:$0xff] %v1992_v46  ;;  %v1995_v57 = vadd.f32 %v2583_v31, %v2340_v41  ;;  %v1986_v50 = vpop.f32.mrb[3].mxu1 }
 0x606   : > { %2046 = vst [vmem:[%s3671_s7] sm:$0xff] %v1984_v61  ;;  %v1987_v26 = vadd.f32 %v2340_v41, %v1986_v50 }
 0x607   : > { %2049 = vst [vmem:[%s3671_s7 + $0x18] sm:$0xff] %v1995_v57 }
 0x608   : > { %2047 = vst [vmem:[%s3671_s7 + $0x8] sm:$0xff] %v1987_v26 }
 0x60a   : > { %v2586_v29 = vpop.f32.mrb[4].mxu1 }
 0x60b   : > { %v2008_v0 = vadd.f32 %v2586_v29, %v2340_v41  ;;  %v1999_v56 = vpop.f32.mrb[5].mxu1 }
 0x60c   : > { %v2000_v39 = vadd.f32 %v2340_v41, %v1999_v56  ;;  %v2587_v2 = vpop.f32.mrb[6].mxu1 }
 0x60d   : > { %2052 = vst [vmem:[%s3671_s7 + $0x30] sm:$0xff] %v2008_v0  ;;  %v2011_v5 = vadd.f32 %v2587_v2, %v2340_v41  ;;  %v2002_v49 = vpop.f32.mrb[7].mxu1 }
 0x60e   : > { %2050 = vst [vmem:[%s3671_s7 + $0x20] sm:$0xff] %v2000_v39  ;;  %v2003_v47 = vadd.f32 %v2340_v41, %v2002_v49 }
 0x60f   : > { %2053 = vst [vmem:[%s3671_s7 + $0x38] sm:$0xff] %v2011_v5 }
 0x610   : > { %2051 = vst [vmem:[%s3671_s7 + $0x28] sm:$0xff] %v2003_v47 }
 0x612   : > { %v2590_v22 = vpop.f32.mrb[8].mxu1 }
 0x613   : > { %v2024_v16 = vadd.f32 %v2590_v22, %v2340_v41  ;;  %v2015_v6 = vpop.f32.mrb[9].mxu1 }
 0x614   : > { %v2016_v43 = vadd.f32 %v2340_v41, %v2015_v6  ;;  %v2591_v7 = vpop.f32.mrb[10].mxu1 }
 0x615   : > { %2056 = vst [vmem:[%s3671_s7 + $0x50] sm:$0xff] %v2024_v16  ;;  %v2027_v51 = vadd.f32 %v2591_v7, %v2340_v41  ;;  %v2018_v11 = vpop.f32.mrb[11].mxu1 }
 0x616   : > { %2054 = vst [vmem:[%s3671_s7 + $0x40] sm:$0xff] %v2016_v43  ;;  %v2019_v18 = vadd.f32 %v2340_v41, %v2018_v11 }
 0x617   : > { %2057 = vst [vmem:[%s3671_s7 + $0x58] sm:$0xff] %v2027_v51 }
 0x618   : > { %2055 = vst [vmem:[%s3671_s7 + $0x48] sm:$0xff] %v2019_v18 }
 0x61a   : > { %v2594_v20 = vpop.f32.mrb[12].mxu1 }
 0x61b   : > { %v2040_v1 = vadd.f32 %v2594_v20, %v2340_v41  ;;  %v2031_v9 = vpop.f32.mrb[13].mxu1 }
 0x61c   : > { %v2032_v28 = vadd.f32 %v2340_v41, %v2031_v9  ;;  %v2595_v36 = vpop.f32.mrb[14].mxu1 }
 0x61d   : > { %2060 = vst [vmem:[%s3671_s7 + $0x70] sm:$0xff] %v2040_v1  ;;  %v2043_v4 = vadd.f32 %v2595_v36, %v2340_v41  ;;  %v2034_v59 = vpop.f32.mrb[15].mxu1 }
 0x61e   : > { %2058 = vst [vmem:[%s3671_s7 + $0x60] sm:$0xff] %v2032_v28  ;;  %v2035_v13 = vadd.f32 %v2340_v41, %v2034_v59 }
 0x61f   : > { %2061 = vst [vmem:[%s3671_s7 + $0x78] sm:$0xff] %v2043_v4 }
 0x620   : > { %2059 = vst [vmem:[%s3671_s7 + $0x68] sm:$0xff] %v2035_v13 }
 0x621 PF: > { %s4531_s13 = sld [smem:[#allocation24_spill]]  ;;  %s4533_s4 = sld [smem:[#allocation25_spill]] }
 0x622   : > { %s4534_s10 = sld [smem:[#allocation34_spill]]  ;;  %s2076_s26 = sshll.u32 %s3671_s7, 4  ;;  %s4347_s26 = int_to_ptr.vmem [resolvable:$true] %s2076_s26 }
 0x623   : > { %s4351_s20 = scalar_lea.sflag [#allocation5], %s479_s28  ;;  %s3106_s25 = scalar_lea.vmem %s4347_s26, 2048 }
 0x624   : > { %p3107_p5 = scmp.ne.s32.totalorder %s4347_s26, %s3106_s25  ;;  %s3256_s11 = smov [#allocation14]  }
 0x625   : > { %s3110_s29 = sshll.u32 %s3256_s11, 4  ;;  %s3111_s29 = int_to_ptr.vmem [resolvable:$false] %s3110_s29 }
 0x626   : > { %s3112_s19 = scalar_lea.vmem %s3111_s29, 4096  ;;  %p3113_p12 = scmp.lt.s32.totalorder %s4347_s26, %s3111_s29 }
 0x627   : > { %s2355_s2 = sshll.u32 %s4531_s13, 11  ;;  %p4535_p3 = scmp.ne.s32.totalorder %s4533_s4, 0 }
 0x628   : > { %s4344_s9 = scalar_lea.hbm %s4534_s10, %s2355_s2  ;;  %p3114_p7 = scmp.lt.s32.totalorder %s3112_s19, %s3106_s25 }
 0x629   : > { %p3108_p6 = pnand %p3107_p5, %p4535_p3 }
 0x62a   : > { %p3115_p1 = por %p3114_p7, %p3113_p12 }
 0x62b   : > { %p3109_p8 = pneg %p3108_p6 }
 0x62d   : > { %p3116_p4 = pnand %p3115_p1, %p3109_p8 }
 0x62f   : > { %3119 = shalt.err (!%p3116_p4)
}
 0x630   : > { %s3120_s28 = scalar_lea.hbm %s4344_s9, 2048  ;;  %s3124_s3 = scalar_lea.hbm %s4534_s10, 4096 }
 0x631   : > { %p3121_p0 = scmp.ne.s32.totalorder %s4344_s9, %s3120_s28  ;;  %p3125_p2 = scmp.lt.u32.totalorder %s4344_s9, %s4534_s10 }
 0x632   : > { %p3126_p10 = scmp.lt.u32.totalorder %s3124_s3, %s3120_s28  ;;  %p3128_p5 = scmp.lt.u32.totalorder %s3120_s28, %s4344_s9 }
 0x633   : > { %p3122_p13 = pnand %p3121_p0, %p4535_p3 }
 0x634   : > { %p3127_p11 = por %p3126_p10, %p3125_p2 }
 0x635   : > { %p3123_p9 = pneg %p3122_p13 }
 0x636   : > { %p3129_p6 = por %p3128_p5, %p3127_p11 }
 0x638   : > { %p3130_p8 = pnand %p3129_p6, %p3123_p9 }
 0x63a   : > { %3133 = shalt.err (!%p3130_p8)
}
 0x63b   : > { %s3257_s2 = smov 128   ;;  %s3258_s6 = smov 8  }
 0x63c   : > { %2632 = dma.vmem_to_hbm [thread:$0]  (%p4535_p3), %s4347_s26, 2048, %s4344_s9, %s4351_s20, %s3257_s2, %s3257_s2, %s3258_s6  }
 0x63d PF: > { %s4536_s14 = sld [smem:[#allocation21_spill]]  ;;  %s4537_s25 = sld [smem:[#allocation26_spill]] }
 0x63e   : > { %p2667_p12 = scmp.ge.s32.totalorder %s3244_s23, 2 }
 0x643   : > { %s2091_s11 = sand.u32 1, %s4536_s14   ;;  %p4538_p7 = scmp.ne.s32.totalorder %s4537_s25, 0 }
 0x644   : > { %s2092_s29 = scalar_lea.sflag [#allocation5], %s2091_s11 }
 0x645   : > { %p2655_p1 = pnand %p2667_p12, %p4538_p7 }
 0x647   : > { %3199 = dma.done.wait (!%p2655_p1), %s2092_s29, 2048  }
 0x648   : > { %3201 = vsyncadd (!%p2655_p1), %s2092_s29, 4294965248  ;;  %s31_s23 = sadd.s32 1, %s3244_s23   ;;  %s4539_s13 = sld [smem:[#allocation22_spill]] }
 0x649   : > { %p28_p4 = scmp.ge.s32.totalorder %s31_s23, 12   ;;  %s4540_s14 = smov %s3212_s15 }
 0x64a   : > { %s4541_s15 = smov %s3546_s16  ;;  %s4542_s16 = smov %s3220_s17 }
 0x64b   : > { %s4543_s17 = smov %s3224_s18  ;;  %s4544_s18 = smov %s3530_s27 }
 0x64c   : > { %s4545_s19 = smov %s3236_s21  ;;  %s4546_s20 = smov %s3240_s22 }
 0x64d   : > { %s4547_s21 = smov %s4550_s5  ;;  %s4548_s22 = smov %s4554_s12 }
 0x64e   :  { %30 = sbr.rel (!%p28_p4) target bundleno = 22 (0x16), region = 142 }
 0x655   :  { %2097 = vsyncpa [#allocation4], 1 }
 0x656   :  { %2099 = vsyncpa [#allocation4 + $0x1], 1 }
 0x657   :  { %2100 = vsyncpa [#allocation7], 1 }
 0x658   :  { %2102 = vsyncpa [#allocation7 + $0x1], 1 }
 0x659   :  { %2103 = vsyncpa [#allocation10], 1 }
 0x65a   :  { %2104 = vsyncpa [#allocation13], 1 }
 0x65b   :  { %2105 = vsyncpa [#allocation5], 1 }
 0x65c   :  { %2107 = vsyncpa [#allocation5 + $0x1], 1 }

</bundles_post_ra>
